<compile_context>
chip_gen: v7x
topology: tpu7x:2x2x1
jax: 0.10.0
libtpu: 0.0.40
codegen_flags: <defaults>
</compile_context>

<pallas_src>
import jax
import jax.numpy as jnp
from jax import lax
from jax.experimental import pallas as pl
from jax.experimental.pallas import tpu as pltpu


# ----------------------------------------------------------------------------
# Fused kernel
# ----------------------------------------------------------------------------
def _make_fused_kernel(*, tile_h, W, pad, dil, c_in, planes, c_out, col0):
    TH = tile_h
    THp = TH + 2 * pad        # rows of the padded conv1-output window

    def kernel(x_ref, w1_ref, w2_ref, w3_ref, b1_ref, b2_ref, b3_ref,
               o_ref, h1p_ref):
        r = pl.program_id(1)
        last_r = pl.num_programs(1) - 1
        row0 = pl.multiple_of(r * TH, TH)
        cdt = h1p_ref.dtype

        def conv1(x_rows):
            # x_rows: (rows, W, c_in) -> (rows, W, planes).  bn1 scale is
            # folded into w1, so the epilogue is bias + ReLU only.
            rows = x_rows.shape[0]
            h = jnp.dot(x_rows.reshape(rows * W, c_in), w1_ref[...],
                        preferred_element_type=jnp.float32)
            h = jnp.maximum(h + b1_ref[...], 0.0)
            return h.astype(cdt).reshape(rows, W, planes)

        # ---- conv2 zero padding, written only where the taps actually read --
        zstrip = jnp.zeros((THp, pad, planes), cdt)
        h1p_ref[:, col0 - pad:col0, :] = zstrip                 # left pad cols
        h1p_ref[:, col0 + W:col0 + W + pad, :] = zstrip         # right pad cols
        zrow = jnp.zeros((pad, W, planes), cdt)

        # ---- stage 1: conv1 + bn1 + relu into the padded VMEM window --------
        x_int = x_ref[0, pl.ds(row0, TH), :, :]      # interior rows (+ residual)
        h1p_ref[pad:pad + TH, col0:col0 + W, :] = conv1(x_int)

        @pl.when(r > 0)                              # top halo from the image
        def _():
            h1p_ref[0:pad, col0:col0 + W, :] = conv1(
                x_ref[0, pl.ds(row0 - pad, pad), :, :])

        @pl.when(r == 0)                             # image top border -> zeros
        def _():
            h1p_ref[0:pad, col0:col0 + W, :] = zrow

        @pl.when(r < last_r)                         # bottom halo from the image
        def _():
            h1p_ref[pad + TH:THp, col0:col0 + W, :] = conv1(
                x_ref[0, pl.ds(row0 + TH, pad), :, :])

        @pl.when(r == last_r)                        # image bottom border -> zeros
        def _():
            h1p_ref[pad + TH:THp, col0:col0 + W, :] = zrow

        # ---- stage 2: 3x3 dilated conv = 9 tap matmuls, value-accumulated ---
        acc2 = None
        for t in range(9):
            ky, kx = divmod(t, 3)
            c0 = col0 - pad + kx * dil
            patch = h1p_ref[ky * dil:ky * dil + TH, c0:c0 + W, :]
            contrib = jnp.dot(patch.reshape(TH * W, planes), w2_ref[t],
                              preferred_element_type=jnp.float32)
            acc2 = contrib if acc2 is None else acc2 + contrib
        h2 = jnp.maximum(acc2 + b2_ref[...], 0.0).astype(cdt)

        # ---- stage 3: conv3 + bn3 + residual add + relu ----------------------
        acc3 = jnp.dot(h2, w3_ref[...], preferred_element_type=jnp.float32)
        res = x_int.reshape(TH * W, c_in).astype(jnp.float32)
        y = jnp.maximum(acc3 + b3_ref[...] + res, 0.0)
        o_ref[0] = y.reshape(TH, W, c_out).astype(o_ref.dtype)

    return kernel


# ----------------------------------------------------------------------------
# Wrapper helpers
# ----------------------------------------------------------------------------
def _fold_bn(params, compute_dtype):
    """Fold BN scales into conv weights in f32, then cast to compute dtype."""
    (w1, s1, b1, w2, s2, b2, w3, s3, b3) = params
    f32 = jnp.float32
    w1f = (w1.astype(f32) * s1.astype(f32)[None, :]).astype(compute_dtype)
    w2f = (w2.astype(f32) * s2.astype(f32)[None, None, None, :]).astype(compute_dtype)
    w3f = (w3.astype(f32) * s3.astype(f32)[None, :]).astype(compute_dtype)
    b1q = b1.reshape(1, -1).astype(f32)
    b2q = b2.reshape(1, -1).astype(f32)
    b3q = b3.reshape(1, -1).astype(f32)
    return w1f, w2f, w3f, b1q, b2q, b3q


def _default_vmem_limit_bytes():
    try:
        cap = pltpu.get_tpu_info().vmem_capacity_bytes
    except Exception:
        cap = 64 * 1024 * 1024          # conservative (v7x-sized) fallback
    return max(32 * 1024 * 1024, min(int(cap * 3 // 4), 100 * 1024 * 1024))


def _pick_tile_h(H, W, c_in, planes, c_out, pad, col0, cd_bytes, out_bytes,
                 budget_bytes):
    """Largest divisor of H whose per-step VMEM footprint fits the budget."""
    w_alloc = col0 + W + pad
    fixed = 2 * H * W * c_in * cd_bytes                      # resident input (2x buffered)
    fixed += 2 * (c_in * planes + 9 * planes * planes + planes * c_out) * cd_bytes
    fixed += 2 * (2 * planes + c_out) * 4                    # biases

    def step_cost(th):
        thp = th + 2 * pad
        c = 2 * th * W * c_out * out_bytes                   # output block (2x buffered)
        c += thp * w_alloc * planes * cd_bytes               # h1p scratch
        c += 3 * th * W * planes * 4                         # conv2 acc / tap temporaries
        c += th * W * (c_in + c_out) * 4                     # epilogue temporaries
        return fixed + c

    candidates = [d for d in range(H, 0, -1) if H % d == 0 and d >= pad]
    for th in candidates:
        if step_cost(th) <= budget_bytes:
            return th
    return candidates[-1]


# ----------------------------------------------------------------------------
# Forward wrappers
# ----------------------------------------------------------------------------
def bottleneck_forward_nhwc(x_nhwc, params, *, dilation=1, tile_h=None,
                            compute_dtype=jnp.bfloat16, out_dtype=None,
                            vmem_limit_bytes=None):
    """Fused Bottleneck forward, channels-last (preferred end-to-end layout)."""
    w1 = params[0]
    N, H, W, c_in = x_nhwc.shape
    planes = w1.shape[1]
    c_out = 4 * planes
    assert c_in == c_out, "downsample=None requires inplanes == planes * 4"

    pad = (3 * dilation - 1) // 2
    assert pad == dilation, "only dilation in {1, 2} supported (stride=1)"

    cd = jnp.dtype(compute_dtype)
    odt = jnp.dtype(out_dtype) if out_dtype is not None else jnp.dtype(x_nhwc.dtype)
    cd_bytes = cd.itemsize
    col0 = 8 * max(1, 4 // cd_bytes)          # 8 for f32, 16 for bf16/f16

    vmem_limit = vmem_limit_bytes or _default_vmem_limit_bytes()
    if tile_h is None:
        tile_h = _pick_tile_h(H, W, c_in, planes, c_out, pad, col0,
                              cd_bytes, odt.itemsize,
                              budget_bytes=int(vmem_limit * 0.6))
    assert H % tile_h == 0 and tile_h >= pad, (H, tile_h, pad)
    n_row_tiles = H // tile_h
    w_alloc = col0 + W + pad

    w1f, w2f, w3f, b1q, b2q, b3q = _fold_bn(params, cd)
    w2k = w2f.reshape(9, planes, planes)      # (ky*3+kx, in, out)
    x_cd = x_nhwc.astype(cd)

    kernel = _make_fused_kernel(tile_h=tile_h, W=W, pad=pad, dil=dilation,
                                c_in=c_in, planes=planes, c_out=c_out, col0=col0)

    return pl.pallas_call(
        kernel,
        out_shape=jax.ShapeDtypeStruct((N, H, W, c_out), odt),
        grid=(N, n_row_tiles),
        in_specs=[
            # Whole image per batch element: block index constant across row
            # tiles -> fetched once per n, residual + halos sliced in VMEM.
            pl.BlockSpec((1, H, W, c_in), lambda n, r: (n, 0, 0, 0)),
            pl.BlockSpec((c_in, planes), lambda n, r: (0, 0)),        # w1 (bn1-folded)
            pl.BlockSpec((9, planes, planes), lambda n, r: (0, 0, 0)),# w2 (bn2-folded)
            pl.BlockSpec((planes, c_out), lambda n, r: (0, 0)),       # w3 (bn3-folded)
            pl.BlockSpec((1, planes), lambda n, r: (0, 0)),           # bn1 bias
            pl.BlockSpec((1, planes), lambda n, r: (0, 0)),           # bn2 bias
            pl.BlockSpec((1, c_out), lambda n, r: (0, 0)),            # bn3 bias
        ],
        out_specs=pl.BlockSpec((1, tile_h, W, c_out), lambda n, r: (n, r, 0, 0)),
        scratch_shapes=[pltpu.VMEM((tile_h + 2 * pad, w_alloc, planes), cd)],
        compiler_params=pltpu.CompilerParams(
            dimension_semantics=("parallel", "parallel"),
            vmem_limit_bytes=vmem_limit),
    )(x_cd, w1f, w2k, w3f, b1q, b2q, b3q)


def bottleneck_forward(x_nchw, params, *, dilation=1, tile_h=None,
                       compute_dtype=jnp.bfloat16, out_dtype=None):
    # NCHW (PyTorch) interface.  Transposes are interface plumbing only; call
    # bottleneck_forward_nhwc directly to stay NHWC end-to-end.
    x_nhwc = jnp.transpose(x_nchw, (0, 2, 3, 1))
    y = bottleneck_forward_nhwc(x_nhwc, params, dilation=dilation,
                                tile_h=tile_h, compute_dtype=compute_dtype,
                                out_dtype=out_dtype)
    return jnp.transpose(y, (0, 3, 1, 2))


# ----------------------------------------------------------------------------
# Pure-JAX reference (same eval-mode BN math + the same BN folding / casts)
# ----------------------------------------------------------------------------
def reference_forward(x_nchw, params, *, dilation=1, compute_dtype=jnp.bfloat16):
    cd = jnp.dtype(compute_dtype)
    w1f, w2f, w3f, b1q, b2q, b3q = _fold_bn(params, cd)
    x = jnp.transpose(x_nchw, (0, 2, 3, 1)).astype(cd)

    def conv(h, w, pad_hw, dil):
        return lax.conv_general_dilated(
            h, w, (1, 1), pad_hw, rhs_dilation=(dil, dil),
            dimension_numbers=("NHWC", "HWIO", "NHWC"),
            preferred_element_type=jnp.float32)

    h1 = jnp.maximum(conv(x, w1f[None, None], [(0, 0), (0, 0)], 1)
                     + b1q.reshape(-1), 0.0).astype(cd)
    pad = (3 * dilation - 1) // 2
    h2 = jnp.maximum(conv(h1, w2f, [(pad, pad), (pad, pad)], dilation)
                     + b2q.reshape(-1), 0.0).astype(cd)
    h3 = conv(h2, w3f[None, None], [(0, 0), (0, 0)], 1)
    y = jnp.maximum(h3 + b3q.reshape(-1) + x.astype(jnp.float32), 0.0)
    return jnp.transpose(y, (0, 3, 1, 2)).astype(x_nchw.dtype)


# ----------------------------------------------------------------------------
# Main
# ----------------------------------------------------------------------------
def _bn_fold(key, c, eps=1e-5):
    k1, k2, k3, k4 = jax.random.split(key, 4)
    gamma = jax.random.uniform(k1, (c,), minval=0.5, maxval=1.5)
    beta = jax.random.normal(k2, (c,)) * 0.1
    mean = jax.random.normal(k3, (c,)) * 0.1
    var = jax.random.uniform(k4, (c,), minval=0.5, maxval=1.5)
    scale = gamma / jnp.sqrt(var + eps)
    bias = beta - mean * scale
    return scale, bias


def _make_case(key, N, H, W, planes):
    inplanes = planes * 4
    ks = jax.random.split(key, 7)
    x = jax.random.normal(ks[0], (N, inplanes, H, W), jnp.float32)
    w1 = jax.random.normal(ks[1], (inplanes, planes), jnp.float32) * 0.2
    w2 = jax.random.normal(ks[2], (3, 3, planes, planes), jnp.float32) * 0.2
    w3 = jax.random.normal(ks[3], (planes, planes * 4), jnp.float32) * 0.2
    s1, b1 = _bn_fold(ks[4], planes)
    s2, b2 = _bn_fold(ks[5], planes)
    s3, b3 = _bn_fold(ks[6], planes * 4)
    return x, (w1, s1, b1, w2, s2, b2, w3, s3, b3)


if __name__ == "__main__":
    key = jax.random.PRNGKey(0)
    k_a, k_b = jax.random.split(key)

    cases = [
        # ((x, params), dilation, tile_h): case A exercises 2 row tiles + halos
        (_make_case(k_a, N=2, H=16, W=16, planes=4), 1, 8),
        # case B: dilation=2 (pad=2), auto tile_h (single row tile), wider ch.
        (_make_case(k_b, N=2, H=8, W=8, planes=8), 2, None),
    ]

    for (x, params), dilation, tile_h in cases:
        # f32 compute path: tight comparison against the JAX reference.
        out = bottleneck_forward(x, params, dilation=dilation, tile_h=tile_h,
                                 compute_dtype=jnp.float32)
        out = jax.block_until_ready(out)
        ref = reference_forward(x, params, dilation=dilation,
                                compute_dtype=jnp.float32)
        assert out.shape == x.shape
        assert jnp.allclose(out, ref, atol=1e-3, rtol=1e-3), (
            "f32 mismatch", float(jnp.max(jnp.abs(out - ref))))

        # bf16 compute path (MXU / bandwidth-friendly): looser tolerance.
        out_bf = bottleneck_forward(x, params, dilation=dilation, tile_h=tile_h,
                                    compute_dtype=jnp.bfloat16)
        out_bf = jax.block_until_ready(out_bf)
        ref_bf = reference_forward(x, params, dilation=dilation,
                                   compute_dtype=jnp.bfloat16)
        assert jnp.allclose(out_bf, ref_bf, atol=5e-2, rtol=5e-2), (
            "bf16 mismatch", float(jnp.max(jnp.abs(out_bf - ref_bf))))

    print("KERNEL_OK")
</pallas_src>

<mosaic_0001>
module attributes {stable_mosaic.version = 11 : i64} {
  func.func @kernel(%arg0: i32, %arg1: i32, %arg2: memref<1x16x16x16xf32, #tpu.memory_space<vmem>>, %arg3: memref<16x4xf32, #tpu.memory_space<vmem>>, %arg4: memref<9x4x4xf32, #tpu.memory_space<vmem>>, %arg5: memref<4x16xf32, #tpu.memory_space<vmem>>, %arg6: memref<1x4xf32, #tpu.memory_space<vmem>>, %arg7: memref<1x4xf32, #tpu.memory_space<vmem>>, %arg8: memref<1x16xf32, #tpu.memory_space<vmem>>, %arg9: memref<1x8x16x16xf32, #tpu.memory_space<vmem>>, %arg10: memref<10x25x4xf32, #tpu.memory_space<vmem>>) attributes {dimension_semantics = [#tpu.dimension_semantics<parallel>, #tpu.dimension_semantics<parallel>], iteration_bounds = array<i64: 2, 2>, scalar_prefetch = 0 : i64, scratch_operands = 1 : i64, tpu.core_type = #tpu.core_type<tc>, window_params = [{transform_indices = @transform_0, window_bounds = array<i64: 1, 16, 16, 16>}, {pipeline_mode = #tpu.pipeline_mode<synchronous>, transform_indices = @transform_1, window_bounds = array<i64: 16, 4>}, {pipeline_mode = #tpu.pipeline_mode<synchronous>, transform_indices = @transform_2, window_bounds = array<i64: 9, 4, 4>}, {pipeline_mode = #tpu.pipeline_mode<synchronous>, transform_indices = @transform_3, window_bounds = array<i64: 4, 16>}, {pipeline_mode = #tpu.pipeline_mode<synchronous>, transform_indices = @transform_4, window_bounds = array<i64: 1, 4>}, {pipeline_mode = #tpu.pipeline_mode<synchronous>, transform_indices = @transform_5, window_bounds = array<i64: 1, 4>}, {pipeline_mode = #tpu.pipeline_mode<synchronous>, transform_indices = @transform_6, window_bounds = array<i64: 1, 16>}, {transform_indices = @transform_7, window_bounds = array<i64: 1, 8, 16, 16>}]} {
    %c8_i32 = arith.constant 8 : i32
    %0 = arith.muli %arg1, %c8_i32 : i32
    %1 = tpu.assume_multiple %0, 8 : i32
    %cst = arith.constant 0.000000e+00 : f32
    %2 = vector.broadcast %cst : f32 to vector<10x1x4xf32>
    %c0 = arith.constant 0 : index
    %c7 = arith.constant 7 : index
    %c0_0 = arith.constant 0 : index
    %3 = vector.load %arg10[%c0, %c7, %c0_0] : memref<10x25x4xf32, #tpu.memory_space<vmem>>, vector<10x1x4xf32>
    tpu.vector_store %arg10[%c0, %c7, %c0_0], %2 {strides = array<i32>} : memref<10x25x4xf32, #tpu.memory_space<vmem>>, vector<10x1x4xf32>,
    %c0_1 = arith.constant 0 : index
    %c24 = arith.constant 24 : index
    %c0_2 = arith.constant 0 : index
    %4 = vector.load %arg10[%c0_1, %c24, %c0_2] : memref<10x25x4xf32, #tpu.memory_space<vmem>>, vector<10x1x4xf32>
    tpu.vector_store %arg10[%c0_1, %c24, %c0_2], %2 {strides = array<i32>} : memref<10x25x4xf32, #tpu.memory_space<vmem>>, vector<10x1x4xf32>,
    %cst_3 = arith.constant 0.000000e+00 : f32
    %5 = vector.broadcast %cst_3 : f32 to vector<1x16x4xf32>
    %c0_4 = arith.constant 0 : index
    %6 = arith.index_cast %1 : i32 to index
    %c0_5 = arith.constant 0 : index
    %c0_6 = arith.constant 0 : index
    %7 = vector.load %arg2[%c0_4, %6, %c0_5, %c0_6] : memref<1x16x16x16xf32, #tpu.memory_space<vmem>>, vector<1x8x16x16xf32>
    %8 = vector.shape_cast %7 : vector<1x8x16x16xf32> to vector<8x16x16xf32>
    %9 = vector.shape_cast %8 : vector<8x16x16xf32> to vector<128x16xf32>
    %c0_7 = arith.constant 0 : index
    %c0_8 = arith.constant 0 : index
    %10 = vector.load %arg3[%c0_7, %c0_8] : memref<16x4xf32, #tpu.memory_space<vmem>>, vector<16x4xf32>
    %cst_9 = arith.constant dense<0.000000e+00> : vector<128x4xf32>
    %11 = tpu.matmul %9, %10, %cst_9 {dimension_numbers = #tpu.dot_dimension_numbers<[1], [0], [0], [1], [0, 0, 1, 1], [], []>} : vector<128x16xf32>, vector<16x4xf32>, vector<128x4xf32> -> vector<128x4xf32>
    %c0_10 = arith.constant 0 : index
    %c0_11 = arith.constant 0 : index
    %12 = vector.load %arg6[%c0_10, %c0_11] : memref<1x4xf32, #tpu.memory_space<vmem>>, vector<1x4xf32>
    %13 = vector.broadcast %12 : vector<1x4xf32> to vector<128x4xf32>
    %14 = arith.addf %11, %13 : vector<128x4xf32>
    %cst_12 = arith.constant 0.000000e+00 : f32
    %15 = vector.broadcast %cst_12 : f32 to vector<128x4xf32>
    %16 = arith.maximumf %14, %15 : vector<128x4xf32>
    %17 = vector.shape_cast %16 : vector<128x4xf32> to vector<8x16x4xf32>
    %c1 = arith.constant 1 : index
    %c8 = arith.constant 8 : index
    %c0_13 = arith.constant 0 : index
    %18 = vector.load %arg10[%c1, %c8, %c0_13] : memref<10x25x4xf32, #tpu.memory_space<vmem>>, vector<8x16x4xf32>
    tpu.vector_store %arg10[%c1, %c8, %c0_13], %17 {strides = array<i32>} : memref<10x25x4xf32, #tpu.memory_space<vmem>>, vector<8x16x4xf32>,
    %c0_i32 = arith.constant 0 : i32
    %19 = arith.cmpi sgt, %arg1, %c0_i32 : i32
    %20 = arith.extui %19 : i1 to i32
    %c0_i32_14 = arith.constant 0 : i32
    %21 = arith.cmpi ne, %20, %c0_i32_14 : i32
    scf.if %21 {
      %c1_i32_90 = arith.constant 1 : i32
      %102 = arith.subi %1, %c1_i32_90 : i32
      %c0_91 = arith.constant 0 : index
      %103 = arith.index_cast %102 : i32 to index
      %c0_92 = arith.constant 0 : index
      %c0_93 = arith.constant 0 : index
      %104 = vector.load %arg2[%c0_91, %103, %c0_92, %c0_93] : memref<1x16x16x16xf32, #tpu.memory_space<vmem>>, vector<1x1x16x16xf32>
      %105 = vector.shape_cast %104 : vector<1x1x16x16xf32> to vector<1x16x16xf32>
      %106 = vector.shape_cast %105 : vector<1x16x16xf32> to vector<16x16xf32>
      %c0_94 = arith.constant 0 : index
      %c0_95 = arith.constant 0 : index
      %107 = vector.load %arg3[%c0_94, %c0_95] : memref<16x4xf32, #tpu.memory_space<vmem>>, vector<16x4xf32>
      %cst_96 = arith.constant dense<0.000000e+00> : vector<16x4xf32>
      %108 = tpu.matmul %106, %107, %cst_96 {dimension_numbers = #tpu.dot_dimension_numbers<[1], [0], [0], [1], [0, 0, 1, 1], [], []>} : vector<16x16xf32>, vector<16x4xf32>, vector<16x4xf32> -> vector<16x4xf32>
      %c0_97 = arith.constant 0 : index
      %c0_98 = arith.constant 0 : index
      %109 = vector.load %arg6[%c0_97, %c0_98] : memref<1x4xf32, #tpu.memory_space<vmem>>, vector<1x4xf32>
      %110 = vector.broadcast %109 : vector<1x4xf32> to vector<16x4xf32>
      %111 = arith.addf %108, %110 : vector<16x4xf32>
      %cst_99 = arith.constant 0.000000e+00 : f32
      %112 = vector.broadcast %cst_99 : f32 to vector<16x4xf32>
      %113 = arith.maximumf %111, %112 : vector<16x4xf32>
      %114 = vector.shape_cast %113 : vector<16x4xf32> to vector<1x16x4xf32>
      %c0_100 = arith.constant 0 : index
      %c8_101 = arith.constant 8 : index
      %c0_102 = arith.constant 0 : index
      %115 = vector.load %arg10[%c0_100, %c8_101, %c0_102] : memref<10x25x4xf32, #tpu.memory_space<vmem>>, vector<1x16x4xf32>
      tpu.vector_store %arg10[%c0_100, %c8_101, %c0_102], %114 {strides = array<i32>} : memref<10x25x4xf32, #tpu.memory_space<vmem>>, vector<1x16x4xf32>,
    } else {
    }
    %c0_i32_15 = arith.constant 0 : i32
    %22 = arith.cmpi eq, %arg1, %c0_i32_15 : i32
    %23 = arith.extui %22 : i1 to i32
    %c0_i32_16 = arith.constant 0 : i32
    %24 = arith.cmpi ne, %23, %c0_i32_16 : i32
    scf.if %24 {
      %c0_90 = arith.constant 0 : index
      %c8_91 = arith.constant 8 : index
      %c0_92 = arith.constant 0 : index
      %102 = vector.load %arg10[%c0_90, %c8_91, %c0_92] : memref<10x25x4xf32, #tpu.memory_space<vmem>>, vector<1x16x4xf32>
      tpu.vector_store %arg10[%c0_90, %c8_91, %c0_92], %5 {strides = array<i32>} : memref<10x25x4xf32, #tpu.memory_space<vmem>>, vector<1x16x4xf32>,
    } else {
    }
    %c1_i32 = arith.constant 1 : i32
    %25 = arith.cmpi slt, %arg1, %c1_i32 : i32
    %26 = arith.extui %25 : i1 to i32
    %c0_i32_17 = arith.constant 0 : i32
    %27 = arith.cmpi ne, %26, %c0_i32_17 : i32
    scf.if %27 {
      %c8_i32_90 = arith.constant 8 : i32
      %102 = arith.addi %1, %c8_i32_90 : i32
      %c0_91 = arith.constant 0 : index
      %103 = arith.index_cast %102 : i32 to index
      %c0_92 = arith.constant 0 : index
      %c0_93 = arith.constant 0 : index
      %104 = vector.load %arg2[%c0_91, %103, %c0_92, %c0_93] : memref<1x16x16x16xf32, #tpu.memory_space<vmem>>, vector<1x1x16x16xf32>
      %105 = vector.shape_cast %104 : vector<1x1x16x16xf32> to vector<1x16x16xf32>
      %106 = vector.shape_cast %105 : vector<1x16x16xf32> to vector<16x16xf32>
      %c0_94 = arith.constant 0 : index
      %c0_95 = arith.constant 0 : index
      %107 = vector.load %arg3[%c0_94, %c0_95] : memref<16x4xf32, #tpu.memory_space<vmem>>, vector<16x4xf32>
      %cst_96 = arith.constant dense<0.000000e+00> : vector<16x4xf32>
      %108 = tpu.matmul %106, %107, %cst_96 {dimension_numbers = #tpu.dot_dimension_numbers<[1], [0], [0], [1], [0, 0, 1, 1], [], []>} : vector<16x16xf32>, vector<16x4xf32>, vector<16x4xf32> -> vector<16x4xf32>
      %c0_97 = arith.constant 0 : index
      %c0_98 = arith.constant 0 : index
      %109 = vector.load %arg6[%c0_97, %c0_98] : memref<1x4xf32, #tpu.memory_space<vmem>>, vector<1x4xf32>
      %110 = vector.broadcast %109 : vector<1x4xf32> to vector<16x4xf32>
      %111 = arith.addf %108, %110 : vector<16x4xf32>
      %cst_99 = arith.constant 0.000000e+00 : f32
      %112 = vector.broadcast %cst_99 : f32 to vector<16x4xf32>
      %113 = arith.maximumf %111, %112 : vector<16x4xf32>
      %114 = vector.shape_cast %113 : vector<16x4xf32> to vector<1x16x4xf32>
      %c9_100 = arith.constant 9 : index
      %c8_101 = arith.constant 8 : index
      %c0_102 = arith.constant 0 : index
      %115 = vector.load %arg10[%c9_100, %c8_101, %c0_102] : memref<10x25x4xf32, #tpu.memory_space<vmem>>, vector<1x16x4xf32>
      tpu.vector_store %arg10[%c9_100, %c8_101, %c0_102], %114 {strides = array<i32>} : memref<10x25x4xf32, #tpu.memory_space<vmem>>, vector<1x16x4xf32>,
    } else {
    }
    %c1_i32_18 = arith.constant 1 : i32
    %28 = arith.cmpi eq, %arg1, %c1_i32_18 : i32
    %29 = arith.extui %28 : i1 to i32
    %c0_i32_19 = arith.constant 0 : i32
    %30 = arith.cmpi ne, %29, %c0_i32_19 : i32
    scf.if %30 {
      %c9_90 = arith.constant 9 : index
      %c8_91 = arith.constant 8 : index
      %c0_92 = arith.constant 0 : index
      %102 = vector.load %arg10[%c9_90, %c8_91, %c0_92] : memref<10x25x4xf32, #tpu.memory_space<vmem>>, vector<1x16x4xf32>
      tpu.vector_store %arg10[%c9_90, %c8_91, %c0_92], %5 {strides = array<i32>} : memref<10x25x4xf32, #tpu.memory_space<vmem>>, vector<1x16x4xf32>,
    } else {
    }
    %c0_20 = arith.constant 0 : index
    %c7_21 = arith.constant 7 : index
    %c0_22 = arith.constant 0 : index
    %31 = vector.load %arg10[%c0_20, %c7_21, %c0_22] : memref<10x25x4xf32, #tpu.memory_space<vmem>>, vector<8x16x4xf32>
    %32 = vector.shape_cast %31 : vector<8x16x4xf32> to vector<128x4xf32>
    %c0_23 = arith.constant 0 : index
    %c0_24 = arith.constant 0 : index
    %c0_25 = arith.constant 0 : index
    %33 = vector.load %arg4[%c0_23, %c0_24, %c0_25] : memref<9x4x4xf32, #tpu.memory_space<vmem>>, vector<1x4x4xf32>
    %34 = vector.shape_cast %33 : vector<1x4x4xf32> to vector<4x4xf32>
    %cst_26 = arith.constant dense<0.000000e+00> : vector<128x4xf32>
    %35 = tpu.matmul %32, %34, %cst_26 {dimension_numbers = #tpu.dot_dimension_numbers<[1], [0], [0], [1], [0, 0, 1, 1], [], []>} : vector<128x4xf32>, vector<4x4xf32>, vector<128x4xf32> -> vector<128x4xf32>
    %c0_27 = arith.constant 0 : index
    %c8_28 = arith.constant 8 : index
    %c0_29 = arith.constant 0 : index
    %36 = vector.load %arg10[%c0_27, %c8_28, %c0_29] : memref<10x25x4xf32, #tpu.memory_space<vmem>>, vector<8x16x4xf32>
    %37 = vector.shape_cast %36 : vector<8x16x4xf32> to vector<128x4xf32>
    %c1_30 = arith.constant 1 : index
    %c0_31 = arith.constant 0 : index
    %c0_32 = arith.constant 0 : index
    %38 = vector.load %arg4[%c1_30, %c0_31, %c0_32] : memref<9x4x4xf32, #tpu.memory_space<vmem>>, vector<1x4x4xf32>
    %39 = vector.shape_cast %38 : vector<1x4x4xf32> to vector<4x4xf32>
    %cst_33 = arith.constant dense<0.000000e+00> : vector<128x4xf32>
    %40 = tpu.matmul %37, %39, %cst_33 {dimension_numbers = #tpu.dot_dimension_numbers<[1], [0], [0], [1], [0, 0, 1, 1], [], []>} : vector<128x4xf32>, vector<4x4xf32>, vector<128x4xf32> -> vector<128x4xf32>
    %41 = arith.addf %35, %40 : vector<128x4xf32>
    %c0_34 = arith.constant 0 : index
    %c9 = arith.constant 9 : index
    %c0_35 = arith.constant 0 : index
    %42 = vector.load %arg10[%c0_34, %c9, %c0_35] : memref<10x25x4xf32, #tpu.memory_space<vmem>>, vector<8x16x4xf32>
    %43 = vector.shape_cast %42 : vector<8x16x4xf32> to vector<128x4xf32>
    %c2 = arith.constant 2 : index
    %c0_36 = arith.constant 0 : index
    %c0_37 = arith.constant 0 : index
    %44 = vector.load %arg4[%c2, %c0_36, %c0_37] : memref<9x4x4xf32, #tpu.memory_space<vmem>>, vector<1x4x4xf32>
    %45 = vector.shape_cast %44 : vector<1x4x4xf32> to vector<4x4xf32>
    %cst_38 = arith.constant dense<0.000000e+00> : vector<128x4xf32>
    %46 = tpu.matmul %43, %45, %cst_38 {dimension_numbers = #tpu.dot_dimension_numbers<[1], [0], [0], [1], [0, 0, 1, 1], [], []>} : vector<128x4xf32>, vector<4x4xf32>, vector<128x4xf32> -> vector<128x4xf32>
    %47 = arith.addf %41, %46 : vector<128x4xf32>
    %c1_39 = arith.constant 1 : index
    %c7_40 = arith.constant 7 : index
    %c0_41 = arith.constant 0 : index
    %48 = vector.load %arg10[%c1_39, %c7_40, %c0_41] : memref<10x25x4xf32, #tpu.memory_space<vmem>>, vector<8x16x4xf32>
    %49 = vector.shape_cast %48 : vector<8x16x4xf32> to vector<128x4xf32>
    %c3 = arith.constant 3 : index
    %c0_42 = arith.constant 0 : index
    %c0_43 = arith.constant 0 : index
    %50 = vector.load %arg4[%c3, %c0_42, %c0_43] : memref<9x4x4xf32, #tpu.memory_space<vmem>>, vector<1x4x4xf32>
    %51 = vector.shape_cast %50 : vector<1x4x4xf32> to vector<4x4xf32>
    %cst_44 = arith.constant dense<0.000000e+00> : vector<128x4xf32>
    %52 = tpu.matmul %49, %51, %cst_44 {dimension_numbers = #tpu.dot_dimension_numbers<[1], [0], [0], [1], [0, 0, 1, 1], [], []>} : vector<128x4xf32>, vector<4x4xf32>, vector<128x4xf32> -> vector<128x4xf32>
    %53 = arith.addf %47, %52 : vector<128x4xf32>
    %c1_45 = arith.constant 1 : index
    %c8_46 = arith.constant 8 : index
    %c0_47 = arith.constant 0 : index
    %54 = vector.load %arg10[%c1_45, %c8_46, %c0_47] : memref<10x25x4xf32, #tpu.memory_space<vmem>>, vector<8x16x4xf32>
    %55 = vector.shape_cast %54 : vector<8x16x4xf32> to vector<128x4xf32>
    %c4 = arith.constant 4 : index
    %c0_48 = arith.constant 0 : index
    %c0_49 = arith.constant 0 : index
    %56 = vector.load %arg4[%c4, %c0_48, %c0_49] : memref<9x4x4xf32, #tpu.memory_space<vmem>>, vector<1x4x4xf32>
    %57 = vector.shape_cast %56 : vector<1x4x4xf32> to vector<4x4xf32>
    %cst_50 = arith.constant dense<0.000000e+00> : vector<128x4xf32>
    %58 = tpu.matmul %55, %57, %cst_50 {dimension_numbers = #tpu.dot_dimension_numbers<[1], [0], [0], [1], [0, 0, 1, 1], [], []>} : vector<128x4xf32>, vector<4x4xf32>, vector<128x4xf32> -> vector<128x4xf32>
    %59 = arith.addf %53, %58 : vector<128x4xf32>
    %c1_51 = arith.constant 1 : index
    %c9_52 = arith.constant 9 : index
    %c0_53 = arith.constant 0 : index
    %60 = vector.load %arg10[%c1_51, %c9_52, %c0_53] : memref<10x25x4xf32, #tpu.memory_space<vmem>>, vector<8x16x4xf32>
    %61 = vector.shape_cast %60 : vector<8x16x4xf32> to vector<128x4xf32>
    %c5 = arith.constant 5 : index
    %c0_54 = arith.constant 0 : index
    %c0_55 = arith.constant 0 : index
    %62 = vector.load %arg4[%c5, %c0_54, %c0_55] : memref<9x4x4xf32, #tpu.memory_space<vmem>>, vector<1x4x4xf32>
    %63 = vector.shape_cast %62 : vector<1x4x4xf32> to vector<4x4xf32>
    %cst_56 = arith.constant dense<0.000000e+00> : vector<128x4xf32>
    %64 = tpu.matmul %61, %63, %cst_56 {dimension_numbers = #tpu.dot_dimension_numbers<[1], [0], [0], [1], [0, 0, 1, 1], [], []>} : vector<128x4xf32>, vector<4x4xf32>, vector<128x4xf32> -> vector<128x4xf32>
    %65 = arith.addf %59, %64 : vector<128x4xf32>
    %c2_57 = arith.constant 2 : index
    %c7_58 = arith.constant 7 : index
    %c0_59 = arith.constant 0 : index
    %66 = vector.load %arg10[%c2_57, %c7_58, %c0_59] : memref<10x25x4xf32, #tpu.memory_space<vmem>>, vector<8x16x4xf32>
    %67 = vector.shape_cast %66 : vector<8x16x4xf32> to vector<128x4xf32>
    %c6 = arith.constant 6 : index
    %c0_60 = arith.constant 0 : index
    %c0_61 = arith.constant 0 : index
    %68 = vector.load %arg4[%c6, %c0_60, %c0_61] : memref<9x4x4xf32, #tpu.memory_space<vmem>>, vector<1x4x4xf32>
    %69 = vector.shape_cast %68 : vector<1x4x4xf32> to vector<4x4xf32>
    %cst_62 = arith.constant dense<0.000000e+00> : vector<128x4xf32>
    %70 = tpu.matmul %67, %69, %cst_62 {dimension_numbers = #tpu.dot_dimension_numbers<[1], [0], [0], [1], [0, 0, 1, 1], [], []>} : vector<128x4xf32>, vector<4x4xf32>, vector<128x4xf32> -> vector<128x4xf32>
    %71 = arith.addf %65, %70 : vector<128x4xf32>
    %c2_63 = arith.constant 2 : index
    %c8_64 = arith.constant 8 : index
    %c0_65 = arith.constant 0 : index
    %72 = vector.load %arg10[%c2_63, %c8_64, %c0_65] : memref<10x25x4xf32, #tpu.memory_space<vmem>>, vector<8x16x4xf32>
    %73 = vector.shape_cast %72 : vector<8x16x4xf32> to vector<128x4xf32>
    %c7_66 = arith.constant 7 : index
    %c0_67 = arith.constant 0 : index
    %c0_68 = arith.constant 0 : index
    %74 = vector.load %arg4[%c7_66, %c0_67, %c0_68] : memref<9x4x4xf32, #tpu.memory_space<vmem>>, vector<1x4x4xf32>
    %75 = vector.shape_cast %74 : vector<1x4x4xf32> to vector<4x4xf32>
    %cst_69 = arith.constant dense<0.000000e+00> : vector<128x4xf32>
    %76 = tpu.matmul %73, %75, %cst_69 {dimension_numbers = #tpu.dot_dimension_numbers<[1], [0], [0], [1], [0, 0, 1, 1], [], []>} : vector<128x4xf32>, vector<4x4xf32>, vector<128x4xf32> -> vector<128x4xf32>
    %77 = arith.addf %71, %76 : vector<128x4xf32>
    %c2_70 = arith.constant 2 : index
    %c9_71 = arith.constant 9 : index
    %c0_72 = arith.constant 0 : index
    %78 = vector.load %arg10[%c2_70, %c9_71, %c0_72] : memref<10x25x4xf32, #tpu.memory_space<vmem>>, vector<8x16x4xf32>
    %79 = vector.shape_cast %78 : vector<8x16x4xf32> to vector<128x4xf32>
    %c8_73 = arith.constant 8 : index
    %c0_74 = arith.constant 0 : index
    %c0_75 = arith.constant 0 : index
    %80 = vector.load %arg4[%c8_73, %c0_74, %c0_75] : memref<9x4x4xf32, #tpu.memory_space<vmem>>, vector<1x4x4xf32>
    %81 = vector.shape_cast %80 : vector<1x4x4xf32> to vector<4x4xf32>
    %cst_76 = arith.constant dense<0.000000e+00> : vector<128x4xf32>
    %82 = tpu.matmul %79, %81, %cst_76 {dimension_numbers = #tpu.dot_dimension_numbers<[1], [0], [0], [1], [0, 0, 1, 1], [], []>} : vector<128x4xf32>, vector<4x4xf32>, vector<128x4xf32> -> vector<128x4xf32>
    %83 = arith.addf %77, %82 : vector<128x4xf32>
    %c0_77 = arith.constant 0 : index
    %c0_78 = arith.constant 0 : index
    %84 = vector.load %arg7[%c0_77, %c0_78] : memref<1x4xf32, #tpu.memory_space<vmem>>, vector<1x4xf32>
    %85 = vector.broadcast %84 : vector<1x4xf32> to vector<128x4xf32>
    %86 = arith.addf %83, %85 : vector<128x4xf32>
    %cst_79 = arith.constant 0.000000e+00 : f32
    %87 = vector.broadcast %cst_79 : f32 to vector<128x4xf32>
    %88 = arith.maximumf %86, %87 : vector<128x4xf32>
    %c0_80 = arith.constant 0 : index
    %c0_81 = arith.constant 0 : index
    %89 = vector.load %arg5[%c0_80, %c0_81] : memref<4x16xf32, #tpu.memory_space<vmem>>, vector<4x16xf32>
    %cst_82 = arith.constant dense<0.000000e+00> : vector<128x16xf32>
    %90 = tpu.matmul %88, %89, %cst_82 {dimension_numbers = #tpu.dot_dimension_numbers<[1], [0], [0], [1], [0, 0, 1, 1], [], []>} : vector<128x4xf32>, vector<4x16xf32>, vector<128x16xf32> -> vector<128x16xf32>
    %91 = vector.shape_cast %8 : vector<8x16x16xf32> to vector<128x16xf32>
    %c0_83 = arith.constant 0 : index
    %c0_84 = arith.constant 0 : index
    %92 = vector.load %arg8[%c0_83, %c0_84] : memref<1x16xf32, #tpu.memory_space<vmem>>, vector<1x16xf32>
    %93 = vector.broadcast %92 : vector<1x16xf32> to vector<128x16xf32>
    %94 = arith.addf %90, %93 : vector<128x16xf32>
    %95 = arith.addf %94, %91 : vector<128x16xf32>
    %cst_85 = arith.constant 0.000000e+00 : f32
    %96 = vector.broadcast %cst_85 : f32 to vector<128x16xf32>
    %97 = arith.maximumf %95, %96 : vector<128x16xf32>
    %98 = vector.shape_cast %97 : vector<128x16xf32> to vector<8x16x16xf32>
    %c0_86 = arith.constant 0 : index
    %c0_87 = arith.constant 0 : index
    %c0_88 = arith.constant 0 : index
    %c0_89 = arith.constant 0 : index
    %99 = vector.load %arg9[%c0_86, %c0_87, %c0_88, %c0_89] : memref<1x8x16x16xf32, #tpu.memory_space<vmem>>, vector<1x8x16x16xf32>
    %100 = vector.shape_cast %99 : vector<1x8x16x16xf32> to vector<8x16x16xf32>
    %101 = vector.shape_cast %98 : vector<8x16x16xf32> to vector<1x8x16x16xf32>
    tpu.vector_store %arg9[%c0_86, %c0_87, %c0_88, %c0_89], %101 {strides = array<i32>} : memref<1x8x16x16xf32, #tpu.memory_space<vmem>>, vector<1x8x16x16xf32>,
    return
  }
  func.func @transform_0(%arg0: i32, %arg1: i32) -> (i32, i32, i32, i32) {
    %c0_i32 = arith.constant 0 : i32
    %c0_i32_0 = arith.constant 0 : i32
    %c0_i32_1 = arith.constant 0 : i32
    %c0_i32_2 = arith.constant 0 : i32
    return %arg0, %c0_i32, %c0_i32_0, %c0_i32_1 : i32, i32, i32, i32
  }
  func.func @transform_1(%arg0: i32, %arg1: i32) -> (i32, i32) {
    %c0_i32 = arith.constant 0 : i32
    %c0_i32_0 = arith.constant 0 : i32
    %c0_i32_1 = arith.constant 0 : i32
    return %c0_i32, %c0_i32_0 : i32, i32
  }
  func.func @transform_2(%arg0: i32, %arg1: i32) -> (i32, i32, i32) {
    %c0_i32 = arith.constant 0 : i32
    %c0_i32_0 = arith.constant 0 : i32
    %c0_i32_1 = arith.constant 0 : i32
    %c0_i32_2 = arith.constant 0 : i32
    return %c0_i32, %c0_i32_0, %c0_i32_1 : i32, i32, i32
  }
  func.func @transform_3(%arg0: i32, %arg1: i32) -> (i32, i32) {
    %c0_i32 = arith.constant 0 : i32
    %c0_i32_0 = arith.constant 0 : i32
    %c0_i32_1 = arith.constant 0 : i32
    return %c0_i32, %c0_i32_0 : i32, i32
  }
  func.func @transform_4(%arg0: i32, %arg1: i32) -> (i32, i32) {
    %c0_i32 = arith.constant 0 : i32
    %c0_i32_0 = arith.constant 0 : i32
    %c0_i32_1 = arith.constant 0 : i32
    return %c0_i32, %c0_i32_0 : i32, i32
  }
  func.func @transform_5(%arg0: i32, %arg1: i32) -> (i32, i32) {
    %c0_i32 = arith.constant 0 : i32
    %c0_i32_0 = arith.constant 0 : i32
    %c0_i32_1 = arith.constant 0 : i32
    return %c0_i32, %c0_i32_0 : i32, i32
  }
  func.func @transform_6(%arg0: i32, %arg1: i32) -> (i32, i32) {
    %c0_i32 = arith.constant 0 : i32
    %c0_i32_0 = arith.constant 0 : i32
    %c0_i32_1 = arith.constant 0 : i32
    return %c0_i32, %c0_i32_0 : i32, i32
  }
  func.func @transform_7(%arg0: i32, %arg1: i32) -> (i32, i32, i32, i32) {
    %c0_i32 = arith.constant 0 : i32
    %c0_i32_0 = arith.constant 0 : i32
    %c0_i32_1 = arith.constant 0 : i32
    return %arg0, %arg1, %c0_i32, %c0_i32_0 : i32, i32, i32, i32
  }
}

</mosaic_0001>

<bundles_post_ra>
// kernel: tpu_custom_call.1
= control target key start
LH: loop header
LB: loop body
LE: loop exit
PB: predicated region body
PF: predicated region fallthrough
CT: control target
= control target key end

     0   :  { %s5374_s0 = inlined_call_operand.hbm [shape: f32[2,16,16,16], index: 0, kind: input, shape index: {}]   ;;  %s5375_s1 = inlined_call_operand.vmem [shape: f32[16,4], index: 1, kind: input, shape index: {}]   ;;  %s5376_s2 = inlined_call_operand.vmem [shape: f32[9,4,4], index: 2, kind: input, shape index: {}]   ;;  %s5377_s3 = inlined_call_operand.vmem [shape: f32[4,16], index: 3, kind: input, shape index: {}]   ;;  %s5378_s4 = inlined_call_operand.vmem [shape: f32[1,4], index: 4, kind: input, shape index: {}]   ;;  %s5379_s5 = inlined_call_operand.vmem [shape: f32[1,4], index: 5, kind: input, shape index: {}]   ;;  %s5380_s6 = inlined_call_operand.vmem [shape: f32[1,16], index: 6, kind: input, shape index: {}]   ;;  %s5381_s7 = inlined_call_operand.hbm [shape: f32[2,16,16,16], index: 7, kind: output, shape index: {}]  }
   0x1   :  { %5390 = sst [smem:[#allocation14_spill]] %s5381_s7 }
   0x2   :  { %12 = vsyncpa [#allocation4], 0 }
   0x3   :  { %14 = vsyncpa [#allocation4 + $0x1], 0 }
   0x4   :  { %15 = vsyncpa [#allocation5], 0 }
   0x5   :  { %17 = vsyncpa [#allocation5 + $0x1], 0  ;;  %s4439_s24 = smov 0   ;;  %s4441_s25 = smov 0  }
   0x6   :  { %s4443_s26 = smov 0   ;;  %s4445_s27 = smov 0  }
   0x7   :  { %s4447_s28 = smov 0   ;;  %s4449_s29 = smov 0  }
   0x8   :  { %s4451_s30 = smov 0   ;;  %s4453_s8 = smov 0  }
   0x9   :  { %s4455_s9 = smov 0   ;;  %s4457_s10 = smov 0  }
   0xa   :  { %s4459_s11 = smov 0  }
   0xb LB: > { %5391 = sst [smem:[#allocation9_spill]] %s4380_s9  ;;  %s3251_s12 = sadd.s32 4294967295, %s4388_s11   ;;  %s4388_s11 = sphi %s4459_s11, %s23_s11   ;;  %s4384_s10 = sphi %s4457_s10, %s5411_s10   ;;  %s4380_s9 = sphi %s4455_s9, %s5410_s9   ;;  %s4376_s8 = sphi %s4453_s8, %s5409_s8   ;;  %s4372_s30 = sphi %s4451_s30, %s5408_s30   ;;  %s4368_s29 = sphi %s4449_s29, %s5417_s29   ;;  %s4364_s28 = sphi %s4447_s28, %s5416_s28   ;;  %s4360_s27 = sphi %s4445_s27, %s5415_s27   ;;  %s4356_s26 = sphi %s4443_s26, %s5414_s26   ;;  %s4352_s25 = sphi %s4441_s25, %s5413_s25   ;;  %s4348_s24 = sphi %s4439_s24, %s5412_s24  }
   0xc   : > { %5392 = sst [smem:[#allocation10_spill]] %s4384_s10  ;;  %s3252_s13 = sadd.s32 4294967294, %s4388_s11  }
   0xd   : > { %s32_s14 = sadd.s32 1, %s4380_s9  ;;  %s35_s15 = sadd.s32 1, %s4384_s10 }
   0xe   : > { %p33_p0 = scmp.ge.s32.totalorder %s32_s14, 2  ;;  %s42_s16 = sadd.s32 1, %s4368_s29 }
   0xf   : > { %p49_p1 = scmp.ne.s32.totalorder %s4368_s29, %s4364_s28  ;;  %p50_p2 = scmp.eq.s32.totalorder %s4388_s11, 0 }
  0x10   : > { %s5419_s14 = smov (%p33_p0, %s32_s14), 0  ;;  %s5421_s15 = smov (!%p33_p0, %s35_s15), %s4384_s10 }
  0x11   : > { %5393 = sst [smem:[#allocation11_spill]] %s5419_s14  ;;  %p4503_p3 = por %p50_p2, %p49_p1 }
  0x12   : > { %p55_p4 = scmp.ne.s32.totalorder %s4364_s28, %s4360_s27  ;;  %p37_p5 = scmp.ge.s32.totalorder %s5421_s15, 2 }
  0x13   : > { %p56_p6 = scmp.eq.s32.totalorder %s3251_s12, 0  ;;  %s192_s18 = ssub.s32 %s4380_s9, %s5419_s14 }
  0x14   : > { %s196_s19 = sadd.s32 1, %s4356_s26  ;;  %s5423_s15 = smov (%p37_p5, %s5421_s15), 0 }
  0x15   : > { %5395 = sst [smem:[#allocation12_spill]] %s5423_s15  ;;  %p4513_p7 = por %p56_p6, %p55_p4 }
  0x16   : > { %p206_p8 = scmp.ne.s32.totalorder %s4356_s26, %s4352_s25  ;;  %s39_s21 = ssub.s32 %s4384_s10, %s5423_s15 }
  0x17   : > { %p207_p9 = scmp.eq.s32.totalorder %s3251_s12, 3  ;;  %p40_p10 = scmp.eq.s32.totalorder %s39_s21, 0 }
  0x18   : > { %s193_s22 = sor.u32 %s192_s18, %s39_s21  ;;  %p212_p13 = scmp.ne.s32.totalorder %s4352_s25, %s4348_s24 }
  0x19   : > { %p194_p11 = scmp.eq.s32.totalorder %s193_s22, 0  ;;  %p4521_p12 = por %p207_p9, %p206_p8 }
  0x1a   : > { %s4526_s27 = scalar_select %p40_p10, %s4368_s29, %s42_s16  }
  0x1b   : > { %s5397_s23 = scalar_select %p4521_p12, 1, 0 }
  0x1c   : > { %s4529_s14 = scalar_select %p194_p11, %s4356_s26, %s196_s19  }
  0x1d   : > { %p213_p0 = scmp.eq.s32.totalorder %s3252_s13, 3  ;;  %p4139_p1 = scmp.lt.s32.totalorder %s4388_s11, 4 }
  0x1e   : > { %s251_s12 = sand.u32 1, %s4368_s29   ;;  %s3483_s21 = sshll.u32 %s4384_s10, 12 }
  0x1f   : > { %p4534_p2 = por %p213_p0, %p212_p13  ;;  %s3255_s18 = sshll.u32 %s251_s12, 8 }
  0x20   : > { %s4543_s7 = scalar_lea.hbm %s5374_s0, %s3483_s21  ;;  %s255_s16 = scalar_lea.vmem [#allocation3], %s3255_s18 }
  0x21   : > { %s5398_s9 = scalar_select %p4534_p2, 1, 0 }
  0x22   : > { %s262_s19 = sshll.u32 %s255_s16, 4  ;;  %p4549_p4 = pnand %p4139_p1, %p4503_p3  ;;  %s4545_s19 = int_to_ptr.vmem [resolvable:$true] %s262_s19 }
  0x23   : > { %s4554_s10 = scalar_lea.sflag [#allocation4], %s251_s12  ;;  %s4236_s15 = scalar_lea.hbm %s4543_s7, 4096 }
  0x24   : > { %p4237_p6 = scmp.ne.s32.totalorder %s4543_s7, %s4236_s15  ;;  %p4238_p8 = pneg %p4549_p4 }
  0x25   : > { %s4241_s17 = scalar_lea.hbm %s5374_s0, 8192  ;;  %p4242_p3 = scmp.lt.u32.totalorder %s4543_s7, %s5374_s0 }
  0x26   : > { %p4239_p9 = pnand %p4238_p8, %p4237_p6  ;;  %p4243_p11 = scmp.lt.u32.totalorder %s4241_s17, %s4236_s15 }
  0x27   : > { %p4245_p0 = scmp.lt.u32.totalorder %s4236_s15, %s4543_s7 }
  0x28   : > { %p4240_p10 = pneg %p4239_p9  ;;  %p4244_p13 = por %p4243_p11, %p4242_p3 }
  0x2a   : > { %p4246_p1 = por %p4245_p0, %p4244_p13 }
  0x2c   : > { %p4247_p5 = pnand %p4246_p1, %p4240_p10 }
  0x2e   : > { %4250 = shalt.err (!%p4247_p5)
}
  0x2f   : > { %s4251_s12 = scalar_lea.vmem %s4545_s19, 4096  ;;  %s4390_s18 = smov [#allocation3]  }
  0x30   : > { %p4252_p6 = scmp.ne.s32.totalorder %s4545_s19, %s4251_s12  ;;  %s4256_s21 = sshll.u32 %s4390_s18, 4  ;;  %s4257_s21 = int_to_ptr.vmem [resolvable:$false] %s4256_s21 }
  0x31   : > { %s4258_s22 = scalar_lea.vmem %s4257_s21, 8192  ;;  %p4259_p12 = scmp.lt.s32.totalorder %s4545_s19, %s4257_s21 }
  0x32   : > { %p4254_p9 = pnand %p4252_p6, %p4238_p8  ;;  %p4260_p3 = scmp.lt.s32.totalorder %s4258_s22, %s4251_s12 }
  0x34   : > { %p4255_p2 = pneg %p4254_p9  ;;  %p4261_p11 = por %p4260_p3, %p4259_p12 }
  0x36   : > { %p4262_p13 = pnand %p4261_p11, %p4255_p2 }
  0x38   : > { %4265 = shalt.err (!%p4262_p13)
}
  0x39   : > { %s4391_s15 = smov 128   ;;  %s4392_s17 = smov 8  }
  0x3a   : > { %4134 = dma.hbm_to_vmem [thread:$0]  (!%p4549_p4), %s4543_s7, 4096, %s4545_s19, %s4554_s10, %s4391_s15, %s4391_s15, %s4392_s17  }
  0x3b   : > { %p270_p5 = scmp.lt.s32.totalorder %s4388_s11, 5  ;;  %p5400_p8 = scmp.ge.s32.totalorder %s4388_s11, 1 }
  0x3d   : > { %p271_p10 = pnand %p5400_p8, %p270_p5 }
  0x3f   : > { %274 = sbr.rel (%p271_p10) target bundleno = 1392 (0x570), region = 48 }
  0x46   : > { %s276_s16 = sand.u32 1, %s4364_s28  }
  0x47   : > { %s4586_s12 = sshll.u32 %s276_s16, 8  ;;  %s277_s18 = scalar_lea.sflag [#allocation4], %s276_s16 }
  0x48   : > { %s280_s21 = scalar_lea.vmem [#allocation3], %s4586_s12 }
  0x49   : > { %4339 = dma.done.wait (%p4513_p7), %s277_s18, 4096  }
  0x4a   : > { %4341 = vsyncadd (%p4513_p7), %s277_s18, 4294963200  ;;  %vm313_vm0 = vcmask 24576   ;;  %s5388_s7 = sand.u32 1, %s4352_s25   ;;  %s3261_s10 = sshll.u32 %s4372_s30, 3  ;;  %v4393_v0 = vmov 0.0   ;;  %vm361_vm1 = vcmask 130048  }
  0x4b   : > { %314 = vst.msk [vmem:[#allocation2 + $0x7] sm:$0x1] %vm313_vm0, %v4393_v0  ;;  %315 = vst.msk [vmem:[#allocation2 + $0x27] sm:$0x1] %vm313_vm0, %v4393_v0  ;;  %s4617_s20 = sshll.u32 %s5388_s7, 7  ;;  %s3484_s19 = sshll.u32 %s4372_s30, 7 }
  0x4c   : > { %316 = vst.msk [vmem:[#allocation2 + $0x47] sm:$0x1] %vm313_vm0, %v4393_v0  ;;  %317 = vst.msk [vmem:[#allocation2 + $0x67] sm:$0x1] %vm313_vm0, %v4393_v0  ;;  %s4622_s13 = scalar_lea.vmem %s280_s21, %s3484_s19 [#allocation3]  ;;  %v352_v1 = vld [vmem:[%s5375_s1] sm:$0xff]  ;;  %v353_v2 = vld [vmem:[%s5375_s1 + $0x8] sm:$0xff] }
  0x4d   : > { %318 = vst.msk [vmem:[#allocation2 + $0x87] sm:$0x1] %vm313_vm0, %v4393_v0  ;;  %319 = vst.msk [vmem:[#allocation2 + $0xa7] sm:$0x1] %vm313_vm0, %v4393_v0  ;;  %v4631_v3 = vld [vmem:[%s4622_s13] sm:$0xff]  ;;  %v3985_v4 = vpack.c.bf16 %v353_v2, %v352_v1  ;;  %v4641_v6 = vld [vmem:[%s4622_s13 + $0x8] sm:$0xff] }
  0x4e   : > { %320 = vst.msk [vmem:[#allocation2 + $0xc7] sm:$0x1] %vm313_vm0, %v4393_v0  ;;  %321 = vst.msk [vmem:[#allocation2 + $0xe7] sm:$0x1] %vm313_vm0, %v4393_v0  ;;  %3687 = vmatprep.mubr.msk.f32.mxu0 %vm361_vm1, %v4631_v3  ;;  %v4636_v5 = vld [vmem:[%s4622_s13 + $0x40] sm:$0xff]  ;;  %v4644_v7 = vld [vmem:[%s4622_s13 + $0x48] sm:$0xff] }
  0x4f   : > { %322 = vst.msk [vmem:[#allocation2 + $0x107] sm:$0x1] %vm313_vm0, %v4393_v0  ;;  %323 = vst.msk [vmem:[#allocation2 + $0x127] sm:$0x1] %vm313_vm0, %v4393_v0  ;;  %3699 = vmatprep.mubr.msk.f32.mxu1 %vm361_vm1, %v4636_v5  ;;  %3986 = vmatprep.subr.bf16.mxu0 %v3985_v4  ;;  %v4647_v8 = vld [vmem:[%s4622_s13 + $0x10] sm:$0xff]  ;;  %v4661_v10 = vld [vmem:[%s4622_s13 + $0x18] sm:$0xff] }
  0x50   : > { %324 = vst.msk [vmem:[#allocation2 + $0x18] sm:$0x1] %vm313_vm0, %v4393_v0  ;;  %325 = vst.msk [vmem:[#allocation2 + $0x38] sm:$0x1] %vm313_vm0, %v4393_v0  ;;  %3997 = vmatprep.subr.bf16.mxu1 %v3985_v4  ;;  %3988 = vmatpush3.bf16.msra.mxu0 %v3985_v4  ;;  %v4650_v9 = vld [vmem:[%s4622_s13 + $0x50] sm:$0xff]  ;;  %v4664_v11 = vld [vmem:[%s4622_s13 + $0x58] sm:$0xff] }
  0x51   : > { %326 = vst.msk [vmem:[#allocation2 + $0x58] sm:$0x1] %vm313_vm0, %v4393_v0  ;;  %327 = vst.msk [vmem:[#allocation2 + $0x78] sm:$0x1] %vm313_vm0, %v4393_v0  ;;  %3998 = vmatpush3.bf16.msra.mxu1 %v3985_v4  ;;  %v4667_v12 = vld [vmem:[%s4622_s13 + $0x20] sm:$0xff]  ;;  %v4681_v14 = vld [vmem:[%s4622_s13 + $0x28] sm:$0xff] }
  0x52   : > { %328 = vst.msk [vmem:[#allocation2 + $0x98] sm:$0x1] %vm313_vm0, %v4393_v0  ;;  %329 = vst.msk [vmem:[#allocation2 + $0xb8] sm:$0x1] %vm313_vm0, %v4393_v0  ;;  %v4670_v13 = vld [vmem:[%s4622_s13 + $0x60] sm:$0xff]  ;;  %v4684_v15 = vld [vmem:[%s4622_s13 + $0x68] sm:$0xff] }
  0x53   : > { %330 = vst.msk [vmem:[#allocation2 + $0xd8] sm:$0x1] %vm313_vm0, %v4393_v0  ;;  %331 = vst.msk [vmem:[#allocation2 + $0xf8] sm:$0x1] %vm313_vm0, %v4393_v0  ;;  %3688 = vmatmul.mubr.msk.f32.vlgmr.msra.gmra.mrb[0].mxu0 %vm361_vm1, %v4641_v6  ;;  %v4687_v16 = vld [vmem:[%s4622_s13 + $0x30] sm:$0xff]  ;;  %v4701_v18 = vld [vmem:[%s4622_s13 + $0x38] sm:$0xff] }
  0x54   : > { %332 = vst.msk [vmem:[#allocation2 + $0x118] sm:$0x1] %vm313_vm0, %v4393_v0  ;;  %333 = vst.msk [vmem:[#allocation2 + $0x138] sm:$0x1] %vm313_vm0, %v4393_v0  ;;  %3700 = vmatmul.mubr.msk.f32.vlgmr.msra.gmra.mrb[0].mxu1 %vm361_vm1, %v4644_v7  ;;  %3690 = vmatprep.mubr.msk.f32.mxu0 %vm361_vm1, %v4647_v8  ;;  %v4690_v17 = vld [vmem:[%s4622_s13 + $0x70] sm:$0xff]  ;;  %v4704_v19 = vld [vmem:[%s4622_s13 + $0x78] sm:$0xff] }
  0x55   : > { %3702 = vmatprep.mubr.msk.f32.mxu1 %vm361_vm1, %v4650_v9  ;;  %5401 = vst [vmem:[#allocation13_spill] sm:$0xff] %v4690_v17  ;;  %v3263_v20 = vld [vmem:[%s5378_s4] ss:$0 sm:$0xff]  ;;  %vm572_vm2 = vcmask 31744   ;;  %s4730_s22 = scalar_lea.vmem [#allocation6], %s4617_s20  ;;  %p3280_p7 = scmp.le.s32.totalorder %s4372_s30, 0 }
  0x56   : > { %s3281_s19 = sadd.s32 (!%p3280_p7), 4294967295, %s3261_s10 }
  0x57   : > { %3691 = vmatmul.mubr.msk.f32.gmra.mrb[2].mxu0 %vm361_vm1, %v4661_v10  ;;  %s3282_s7 = sshll.u32 (!%p3280_p7), %s3281_s19, 4 }
  0x58   : > { %3703 = vmatmul.mubr.msk.f32.gmra.mrb[2].mxu1 %vm361_vm1, %v4664_v11  ;;  %3693 = vmatprep.mubr.msk.f32.mxu0 %vm361_vm1, %v4667_v12  ;;  %s595_s20 = scalar_lea.vmem (!%p3280_p7), %s280_s21, %s3282_s7 [#allocation3] }
  0x59   : > { %3705 = vmatprep.mubr.msk.f32.mxu1 %vm361_vm1, %v4670_v13 }
  0x5b   : > { %3694 = vmatmul.mubr.msk.f32.gmra.mrb[4].mxu0 %vm361_vm1, %v4681_v14 }
  0x5c   : > { %3706 = vmatmul.mubr.msk.f32.gmra.mrb[4].mxu1 %vm361_vm1, %v4684_v15  ;;  %3696 = vmatprep.mubr.msk.f32.mxu0 %vm361_vm1, %v4687_v16 }
  0x5d   : > { %3708 = vmatprep.mubr.msk.f32.mxu1 %vm361_vm1, %v4690_v17 }
  0x5f   : > { %3697 = vmatmul.mubr.msk.f32.gmra.mrb[6].mxu0 %vm361_vm1, %v4701_v18 }
  0x60   : > { %3709 = vmatmul.mubr.msk.f32.gmra.mrb[6].mxu1 %vm361_vm1, %v4704_v19 }
 0x126   : > { %v3689_v21 = vpop.f32.mrb[0].mxu0 }
 0x127   : > { %v3701_v22 = vpop.f32.mrb[0].mxu1  ;;  %v482_v23 = vadd.f32 %v3689_v21, %v3263_v20  ;;  %v476_v25 = vpop.f32.mrb[1].mxu0 }
 0x128   : > { %v522_v24 = vadd.f32 %v3701_v22, %v3263_v20  ;;  %v516_v26 = vpop.f32.mrb[1].mxu1  ;;  %v477_v27 = vadd.f32 %v3263_v20, %v476_v25  ;;  %v599_v22 = vld [vmem:[%s5375_s1 + $0x8] sm:$0xff] (!%p3280_p7) }
 0x129   : > { %v517_v28 = vadd.f32 %v3263_v20, %v516_v26  ;;  %v556_v29 = vmax.f32 %v482_v23, 0.0  ;;  %v597_v25 = vld [vmem:[%s595_s20 + $0x8] sm:$0xff] (!%p3280_p7)  ;;  %v3283_v26 = vld [vmem:[%s5378_s4] ss:$0 sm:$0xff] (!%p3280_p7) }
 0x12a   : > { %v564_v30 = vmax.f32 %v522_v24, 0.0  ;;  %v555_v31 = vmax.f32 %v477_v27, 0.0  ;;  %v3692_v33 = vpop.f32.mrb[2].mxu0  ;;  %v596_v24 = vld [vmem:[%s595_s20] sm:$0xff] (!%p3280_p7) }
 0x12b   : > { %v563_v32 = vmax.f32 %v517_v28, 0.0  ;;  %v3704_v34 = vpop.f32.mrb[2].mxu1  ;;  %574 = vst.msk [vmem:[#allocation2 + $0x30] sm:$0xff] %vm572_vm2, %v556_v29  ;;  %v492_v35 = vadd.f32 %v3692_v33, %v3263_v20  ;;  %v486_v37 = vpop.f32.mrb[3].mxu0  ;;  %3715 = vmatprep.mubr.msk.f32.mxu0 (!%p3280_p7), %vm361_vm1, %v596_v24 }
 0x12c   : > { %582 = vst.msk [vmem:[#allocation2 + $0xb0] sm:$0xff] %vm572_vm2, %v564_v30  ;;  %v532_v36 = vadd.f32 %v3704_v34, %v3263_v20  ;;  %v526_v38 = vpop.f32.mrb[3].mxu1  ;;  %573 = vst.msk [vmem:[#allocation2 + $0x28] sm:$0xff] %vm572_vm2, %v555_v31  ;;  %v487_v39 = vadd.f32 %v3263_v20, %v486_v37 }
 0x12d   : > { %581 = vst.msk [vmem:[#allocation2 + $0xa8] sm:$0xff] %vm572_vm2, %v563_v32  ;;  %v527_v40 = vadd.f32 %v3263_v20, %v526_v38  ;;  %v558_v41 = vmax.f32 %v492_v35, 0.0 }
 0x12e   : > { %v566_v42 = vmax.f32 %v532_v36, 0.0  ;;  %v557_v43 = vmax.f32 %v487_v39, 0.0  ;;  %v3695_v45 = vpop.f32.mrb[4].mxu0 }
 0x12f   : > { %v565_v44 = vmax.f32 %v527_v40, 0.0  ;;  %v3707_v46 = vpop.f32.mrb[4].mxu1  ;;  %576 = vst.msk [vmem:[#allocation2 + $0x50] sm:$0xff] %vm572_vm2, %v558_v41  ;;  %v502_v47 = vadd.f32 %v3695_v45, %v3263_v20  ;;  %v496_v49 = vpop.f32.mrb[5].mxu0 }
 0x130   : > { %584 = vst.msk [vmem:[#allocation2 + $0xd0] sm:$0xff] %vm572_vm2, %v566_v42  ;;  %v542_v48 = vadd.f32 %v3707_v46, %v3263_v20  ;;  %v536_v50 = vpop.f32.mrb[5].mxu1  ;;  %575 = vst.msk [vmem:[#allocation2 + $0x48] sm:$0xff] %vm572_vm2, %v557_v43  ;;  %v497_v51 = vadd.f32 %v3263_v20, %v496_v49 }
 0x131   : > { %583 = vst.msk [vmem:[#allocation2 + $0xc8] sm:$0xff] %vm572_vm2, %v565_v44  ;;  %v537_v52 = vadd.f32 %v3263_v20, %v536_v50  ;;  %v560_v53 = vmax.f32 %v502_v47, 0.0 }
 0x132   : > { %v568_v54 = vmax.f32 %v542_v48, 0.0  ;;  %v559_v55 = vmax.f32 %v497_v51, 0.0  ;;  %v3698_v57 = vpop.f32.mrb[6].mxu0 }
 0x133   : > { %v567_v56 = vmax.f32 %v537_v52, 0.0  ;;  %v3710_v58 = vpop.f32.mrb[6].mxu1  ;;  %578 = vst.msk [vmem:[#allocation2 + $0x70] sm:$0xff] %vm572_vm2, %v560_v53  ;;  %v512_v59 = vadd.f32 %v3698_v57, %v3263_v20  ;;  %v506_v61 = vpop.f32.mrb[7].mxu0  ;;  %592 = sbr.rel (%p3280_p7) target bundleno = 534 (0x216), region = 56 }
 0x134   : > { %586 = vst.msk [vmem:[#allocation2 + $0xf0] sm:$0xff] %vm572_vm2, %v568_v54  ;;  %v552_v60 = vadd.f32 %v3710_v58, %v3263_v20  ;;  %v546_v62 = vpop.f32.mrb[7].mxu1  ;;  %577 = vst.msk [vmem:[#allocation2 + $0x68] sm:$0xff] %vm572_vm2, %v559_v55  ;;  %v507_v63 = vadd.f32 %v3263_v20, %v506_v61 }
 0x135   : > { %585 = vst.msk [vmem:[#allocation2 + $0xe8] sm:$0xff] %vm572_vm2, %v567_v56  ;;  %v547_v0 = vadd.f32 %v3263_v20, %v546_v62  ;;  %v562_v1 = vmax.f32 %v512_v59, 0.0  ;;  %v598_v20 = vld [vmem:[%s5375_s1] sm:$0xff] (!%p3280_p7) }
 0x136   : > { %v570_v2 = vmax.f32 %v552_v60, 0.0  ;;  %v561_v4 = vmax.f32 %v507_v63, 0.0  ;;  %v3989_v23 = vpack.c.bf16 (!%p3280_p7), %v599_v22, %v598_v20 }
 0x137   : > { %v569_v21 = vmax.f32 %v547_v0, 0.0  ;;  %580 = vst.msk [vmem:[#allocation2 + $0x90] sm:$0xff] %vm572_vm2, %v562_v1 }
 0x138   : > { %588 = vst.msk [vmem:[#allocation2 + $0x110] sm:$0xff] %vm572_vm2, %v570_v2  ;;  %579 = vst.msk [vmem:[#allocation2 + $0x88] sm:$0xff] %vm572_vm2, %v561_v4  ;;  %3990 = vmatprep.subr.bf16.mxu0 (!%p3280_p7), %v3989_v23 }
 0x139   : > { %587 = vst.msk [vmem:[#allocation2 + $0x108] sm:$0xff] %vm572_vm2, %v569_v21  ;;  %3992 = vmatpush3.bf16.msra.mxu0 (!%p3280_p7), %v3989_v23 }
 0x13c   : > { %3716 = vmatmul.mubr.msk.f32.vlgmr.msra.gmra.mrb[0].mxu0 %vm361_vm1, %v597_v25 }
 0x20f   : > { %v3717_v27 = vpop.f32.mrb[0].mxu0 }
 0x210   : > { %v685_v28 = vadd.f32 %v3717_v27, %v3283_v26  ;;  %v679_v29 = vpop.f32.mrb[1].mxu0 }
 0x211   : > { %v680_v30 = vadd.f32 %v3283_v26, %v679_v29 }
 0x212   : > { %v689_v31 = vmax.f32 %v685_v28, 0.0 }
 0x213   : > { %v688_v32 = vmax.f32 %v680_v30, 0.0 }
 0x214   : > { %691 = vst.msk [vmem:[#allocation2 + $0x10] sm:$0xff] %vm572_vm2, %v689_v31 }
 0x215   : > { %690 = vst.msk [vmem:[#allocation2 + $0x8] sm:$0xff] %vm572_vm2, %v688_v32 }
 0x216 PF: > { %p3286_p12 = scmp.ne.s32.totalorder %s4372_s30, 0 }
 0x217   : > { %v4394_v33 = vmov (!%p3286_p12), 0.0  }
 0x218   : > { %695 = sbr.rel (%p3286_p12) target bundleno = 543 (0x21f), region = 60  ;;  %696 = vst.msk [vmem:[#allocation2 + $0x8] sm:$0xff] (!%p3286_p12), %vm572_vm2, %v4394_v33  ;;  %697 = vst.msk [vmem:[#allocation2 + $0x10] sm:$0xff] (!%p3286_p12), %vm572_vm2, %v4394_v33 }
 0x21f PF: > { %p3287_p2 = scmp.ge.s32.totalorder %s4372_s30, 1 }
 0x220   : > { %v707_v34 = vld [vmem:[%s5375_s1] sm:$0xff] (!%p3287_p2)  ;;  %v708_v35 = vld [vmem:[%s5375_s1 + $0x8] sm:$0xff] (!%p3287_p2) }
 0x221   : > { %701 = sbr.rel (%p3287_p2) target bundleno = 769 (0x301), region = 64  ;;  %v3290_v36 = vld [vmem:[%s4622_s13 + $0x80] sm:$0xff] (!%p3287_p2)  ;;  %v3993_v37 = vpack.c.bf16 (!%p3287_p2), %v708_v35, %v707_v34  ;;  %v3291_v38 = vld [vmem:[%s4622_s13 + $0x88] sm:$0xff] (!%p3287_p2) }
 0x222   : > { %3722 = vmatprep.mubr.msk.f32.mxu0 (!%p3287_p2), %vm361_vm1, %v3290_v36  ;;  %v3292_v39 = vld [vmem:[%s5378_s4] ss:$0 sm:$0xff] (!%p3287_p2) }
 0x223   : > { %3994 = vmatprep.subr.bf16.mxu0 (!%p3287_p2), %v3993_v37 }
 0x224   : > { %3996 = vmatpush3.bf16.msra.mxu0 (!%p3287_p2), %v3993_v37 }
 0x227   : > { %3723 = vmatmul.mubr.msk.f32.vlgmr.msra.gmra.mrb[0].mxu0 (!%p3287_p2), %vm361_vm1, %v3291_v38 }
 0x2fa   : > { %v3724_v40 = vpop.f32.mrb[0].mxu0 }
 0x2fb   : > { %v794_v41 = vadd.f32 %v3724_v40, %v3292_v39  ;;  %v788_v42 = vpop.f32.mrb[1].mxu0 }
 0x2fc   : > { %v789_v43 = vadd.f32 %v3292_v39, %v788_v42 }
 0x2fd   : > { %v798_v44 = vmax.f32 %v794_v41, 0.0 }
 0x2fe   : > { %v797_v45 = vmax.f32 %v789_v43, 0.0 }
 0x2ff   : > { %801 = vst.msk [vmem:[#allocation2 + $0x130] sm:$0xff] %vm572_vm2, %v798_v44 }
 0x300   : > { %800 = vst.msk [vmem:[#allocation2 + $0x128] sm:$0xff] %vm572_vm2, %v797_v45 }
 0x301 PF: > { %p3295_p4 = scmp.ne.s32.totalorder %s4372_s30, 1 }
 0x302   : > { %v4395_v46 = vmov (!%p3295_p4), 0.0  }
 0x303   : > { %805 = sbr.rel (%p3295_p4) target bundleno = 778 (0x30a), region = 68  ;;  %807 = vst.msk [vmem:[#allocation2 + $0x128] sm:$0xff] (!%p3295_p4), %vm572_vm2, %v4395_v46  ;;  %808 = vst.msk [vmem:[#allocation2 + $0x130] sm:$0xff] (!%p3295_p4), %vm572_vm2, %v4395_v46 }
 0x30a PF: > { %v3296_v47 = vld [vmem:[%s5376_s2 + $0x4] sm:$0xf]  ;;  %vm892_vm3 = vcmask 1043456   ;;  %v3367_v48 = vld [vmem:[%s5376_s2 + $0x10] sm:$0xf]  ;;  %v826_v49 = vld [vmem:[#allocation2 + $0x8] sm:$0xff] }
 0x30b   : > { %3725 = vmatprep.subr.msk.mxu1 %vm892_vm3, %v3296_v47  ;;  %3829 = vmatprep.subr.msk.mxu0 %vm892_vm3, %v3367_v48  ;;  %v1697_v50 = vld [vmem:[#allocation2 + $0x28] sm:$0xff]  ;;  %v827_v51 = vld [vmem:[#allocation2 + $0x10] sm:$0xff]  ;;  %v825_v57 = vld [vmem:[%s5376_s2] sm:$0xf]  ;;  %s3486_s20 = sshll.u32 %s4372_s30, 4  ;;  %s3479_s15 = sshll.u32 %s4376_s8, 5 }
 0x30c   : > { %v1698_v52 = vld [vmem:[#allocation2 + $0x30] sm:$0xff]  ;;  %3726 = vmatpush3.msk.msra.mxu1 %vm892_vm3, %v3296_v47  ;;  %3727 = vmatprep.mubr.msk.f32.mxu1 %vm572_vm2, %v826_v49  ;;  %v4787_v54 = vld [vmem:[#allocation2 + $0x48] sm:$0xff]  ;;  %v3403_v58 = vld [vmem:[%s5376_s2 + $0x18] sm:$0xf]  ;;  %s3153_s17 = sadd.s32 %s3486_s20, %s3479_s15  ;;  %s3156_s8 = sshll.u32 %s4730_s22, 4  ;;  %s5305_s8 = int_to_ptr.vmem [resolvable:$true] %s3156_s8 }
 0x30d   : > { %v3385_v53 = vld [vmem:[%s5376_s2 + $0x14] sm:$0xf]  ;;  %3830 = vmatpush3.msk.msra.mxu0 %vm892_vm3, %v3367_v48  ;;  %3831 = vmatprep.mubr.msk.f32.mxu0 %vm572_vm2, %v1697_v50  ;;  %v4798_v56 = vld [vmem:[#allocation2 + $0x68] sm:$0xff]  ;;  %v4903_v29 = vld [vmem:[%s5376_s2 + $0x1c] sm:$0xf]  ;;  %s3480_s30 = sshll.u32 %s3153_s17, 7 }
 0x30e   : > { %3728 = vmatmul.mubr.msk.f32.vlgmr.msra.gmra.mrb[0].mxu1 %vm572_vm2, %v827_v51  ;;  %3832 = vmatmul.mubr.msk.f32.vlgmr.msra.gmra.mrb[0].mxu0 %vm572_vm2, %v1698_v52  ;;  %v4793_v55 = vld [vmem:[#allocation2 + $0x50] sm:$0xff]  ;;  %v4815_v60 = vld [vmem:[#allocation2 + $0x88] sm:$0xff]  ;;  %v3439_v17 = vld [vmem:[%s5376_s2 + $0x20] sm:$0xf]  ;;  %s5403_s7 = sld [smem:[#allocation14_spill]]  ;;  %s5404_s16 = sand.u32 1, %s4352_s25  }
 0x30f   : > { %3855 = vmatprep.subr.msk.mxu0 %vm892_vm3, %v3385_v53  ;;  %3730 = vmatprep.mubr.msk.f32.mxu1 %vm572_vm2, %v1697_v50  ;;  %v4813_v59 = vld [vmem:[#allocation2 + $0x70] sm:$0xff]  ;;  %v4830_v62 = vld [vmem:[#allocation2 + $0xa8] sm:$0xff]  ;;  %s5313_s18 = scalar_lea.sflag [#allocation5], %s5404_s16  ;;  %s4266_s13 = scalar_lea.vmem %s5305_s8, 2048 }
 0x310   : > { %3856 = vmatpush3.msk.msra.mxu0 %vm892_vm3, %v3385_v53  ;;  %3834 = vmatprep.mubr.msk.f32.mxu0 %vm572_vm2, %v4787_v54  ;;  %v4828_v61 = vld [vmem:[#allocation2 + $0x90] sm:$0xff]  ;;  %v4842_v0 = vld [vmem:[#allocation2 + $0xc8] sm:$0xff]  ;;  %p4267_p0 = scmp.ne.s32.totalorder %s5305_s8, %s4266_s13  ;;  %p5405_p1 = scmp.ne.s32.totalorder %s5397_s23, 0 }
 0x311   : > { %3751 = vmatprep.subr.msk.mxu1 %vm892_vm3, %v825_v57  ;;  %3881 = vmatprep.subr.msk.mxu0 %vm892_vm3, %v3403_v58  ;;  %v4840_v63 = vld [vmem:[#allocation2 + $0xb0] sm:$0xff]  ;;  %v3331_v1 = vld [vmem:[%s5376_s2 + $0x8] sm:$0xf]  ;;  %v4908_v30 = vld [vmem:[%s5376_s2 + $0xc] sm:$0xf]  ;;  %s4396_s19 = smov [#allocation6]  }
 0x312   : > { %3731 = vmatmul.mubr.msk.f32.gmra.mrb[2].mxu1 %vm572_vm2, %v1698_v52  ;;  %3835 = vmatmul.mubr.msk.f32.gmra.mrb[2].mxu0 %vm572_vm2, %v4793_v55  ;;  %v4856_v2 = vld [vmem:[#allocation2 + $0xd0] sm:$0xff]  ;;  %v4858_v4 = vld [vmem:[#allocation2 + $0xe8] sm:$0xff]  ;;  %p4268_p6 = pnand %p4267_p0, %p5405_p1  ;;  %s4270_s20 = sshll.u32 %s4396_s19, 4  ;;  %s4271_s20 = int_to_ptr.vmem [resolvable:$false] %s4270_s20 }
 0x313   : > { %3733 = vmatprep.mubr.msk.f32.mxu1 %vm572_vm2, %v4787_v54  ;;  %3837 = vmatprep.mubr.msk.f32.mxu0 %vm572_vm2, %v4798_v56  ;;  %v4868_v21 = vld [vmem:[#allocation2 + $0xf0] sm:$0xff]  ;;  %v4870_v20 = vld [vmem:[#allocation2 + $0x108] sm:$0xff]  ;;  %s4272_s15 = scalar_lea.vmem %s4271_s20, 4096  ;;  %p4273_p3 = scmp.lt.s32.totalorder %s5305_s8, %s4271_s20 }
 0x314   : > { %3752 = vmatpush3.msk.msra.mxu1 %vm892_vm3, %v825_v57  ;;  %v4880_v22 = vld [vmem:[#allocation2 + $0x110] sm:$0xff]  ;;  %v809_v23 = vld [vmem:[#allocation2 + $0x7] sm:$0xff]  ;;  %s5303_s10 = scalar_lea.hbm %s5403_s7, %s3480_s30  ;;  %p4269_p9 = pneg %p4268_p6 }
 0x315   : > { %3777 = vmatprep.subr.msk.mxu1 %vm892_vm3, %v3331_v1  ;;  %v4882_v24 = vld [vmem:[#allocation2 + $0x29] sm:$0xff]  ;;  %v4891_v26 = vld [vmem:[#allocation2 + $0x31] sm:$0xff]  ;;  %p4274_p11 = scmp.lt.s32.totalorder %s4272_s15, %s4266_s13 }
 0x316   : > { %3734 = vmatmul.mubr.msk.f32.gmra.mrb[4].mxu1 %vm572_vm2, %v4793_v55  ;;  %3838 = vmatmul.mubr.msk.f32.gmra.mrb[4].mxu0 %vm572_vm2, %v4813_v59  ;;  %v810_v25 = vld [vmem:[#allocation2 + $0xf] sm:$0xff]  ;;  %v4893_v27 = vld [vmem:[#allocation2 + $0x27] sm:$0xff] }
 0x317   : > { %3736 = vmatprep.mubr.msk.f32.mxu1 %vm572_vm2, %v4798_v56  ;;  %3840 = vmatprep.mubr.msk.f32.mxu0 %vm572_vm2, %v4815_v60  ;;  %v4895_v28 = vld [vmem:[#allocation2 + $0x49] sm:$0xff]  ;;  %v4915_v32 = vld [vmem:[#allocation2 + $0x51] sm:$0xff]  ;;  %p4275_p13 = por %p4274_p11, %p4273_p3 }
 0x318   : > { %v4913_v31 = vld [vmem:[#allocation2 + $0x2f] sm:$0xff]  ;;  %v4919_v33 = vld [vmem:[#allocation2 + $0x47] sm:$0xff] }
 0x319   : > { %v4921_v34 = vld [vmem:[#allocation2 + $0x69] sm:$0xff]  ;;  %v4938_v36 = vld [vmem:[#allocation2 + $0x71] sm:$0xff]  ;;  %p4276_p5 = pnand %p4275_p13, %p4269_p9 }
 0x31a   : > { %3737 = vmatmul.mubr.msk.f32.gmra.mrb[6].mxu1 %vm572_vm2, %v4813_v59  ;;  %3841 = vmatmul.mubr.msk.f32.gmra.mrb[6].mxu0 %vm572_vm2, %v4828_v61  ;;  %v4936_v35 = vld [vmem:[#allocation2 + $0x4f] sm:$0xff]  ;;  %v4940_v37 = vld [vmem:[#allocation2 + $0x67] sm:$0xff] }
 0x31b   : > { %3739 = vmatprep.mubr.msk.f32.mxu1 %vm572_vm2, %v4815_v60  ;;  %3843 = vmatprep.mubr.msk.f32.mxu0 %vm572_vm2, %v4830_v62  ;;  %v4942_v38 = vld [vmem:[#allocation2 + $0x89] sm:$0xff]  ;;  %v4954_v40 = vld [vmem:[#allocation2 + $0x91] sm:$0xff] }
 0x31c   : > { %v4952_v39 = vld [vmem:[#allocation2 + $0x6f] sm:$0xff]  ;;  %v4956_v41 = vld [vmem:[#allocation2 + $0x87] sm:$0xff] }
 0x31d   : > { %v4958_v42 = vld [vmem:[#allocation2 + $0xa9] sm:$0xff]  ;;  %v4970_v44 = vld [vmem:[#allocation2 + $0xb1] sm:$0xff] }
 0x31e   : > { %3740 = vmatmul.mubr.msk.f32.gmra.mrb[8].mxu1 %vm572_vm2, %v4828_v61  ;;  %3844 = vmatmul.mubr.msk.f32.gmra.mrb[8].mxu0 %vm572_vm2, %v4840_v63  ;;  %v4968_v43 = vld [vmem:[#allocation2 + $0x8f] sm:$0xff]  ;;  %v4972_v45 = vld [vmem:[#allocation2 + $0xa7] sm:$0xff] }
 0x31f   : > { %3742 = vmatprep.mubr.msk.f32.mxu1 %vm572_vm2, %v4830_v62  ;;  %3846 = vmatprep.mubr.msk.f32.mxu0 %vm572_vm2, %v4842_v0  ;;  %v4974_v46 = vld [vmem:[#allocation2 + $0xc9] sm:$0xff]  ;;  %v4986_v48 = vld [vmem:[#allocation2 + $0xd1] sm:$0xff] }
 0x320   : > { %v4984_v47 = vld [vmem:[#allocation2 + $0xaf] sm:$0xff]  ;;  %v4988_v49 = vld [vmem:[#allocation2 + $0xc7] sm:$0xff] }
 0x321   : > { %v4990_v50 = vld [vmem:[#allocation2 + $0xe9] sm:$0xff]  ;;  %v5002_v52 = vld [vmem:[#allocation2 + $0xf1] sm:$0xff] }
 0x322   : > { %3743 = vmatmul.mubr.msk.f32.gmra.mrb[10].mxu1 %vm572_vm2, %v4840_v63  ;;  %3847 = vmatmul.mubr.msk.f32.gmra.mrb[10].mxu0 %vm572_vm2, %v4856_v2  ;;  %v5000_v51 = vld [vmem:[#allocation2 + $0xcf] sm:$0xff]  ;;  %v5004_v53 = vld [vmem:[#allocation2 + $0xe7] sm:$0xff] }
 0x323   : > { %3745 = vmatprep.mubr.msk.f32.mxu1 %vm572_vm2, %v4842_v0  ;;  %3849 = vmatprep.mubr.msk.f32.mxu0 %vm572_vm2, %v4858_v4  ;;  %v5006_v57 = vld [vmem:[#allocation2 + $0x109] sm:$0xff] }
 0x326   : > { %3746 = vmatmul.mubr.msk.f32.gmra.mrb[12].mxu1 %vm572_vm2, %v4856_v2  ;;  %3850 = vmatmul.mubr.msk.f32.gmra.mrb[12].mxu0 %vm572_vm2, %v4868_v21 }
 0x327   : > { %3748 = vmatprep.mubr.msk.f32.mxu1 %vm572_vm2, %v4858_v4  ;;  %3852 = vmatprep.mubr.msk.f32.mxu0 %vm572_vm2, %v4870_v20 }
 0x32a   : > { %3749 = vmatmul.mubr.msk.f32.gmra.mrb[14].mxu1 %vm572_vm2, %v4868_v21  ;;  %3853 = vmatmul.mubr.msk.f32.gmra.mrb[14].mxu0 %vm572_vm2, %v4880_v22 }
 0x32b   : > { %3753 = vmatprep.mubr.msk.f32.mxu1 %vm572_vm2, %v809_v23  ;;  %3857 = vmatprep.mubr.msk.f32.mxu0 %vm572_vm2, %v4882_v24  ;;  %v1237_v23 = vld [vmem:[#allocation2 + $0x9] sm:$0xff] }
 0x32e   : > { %3754 = vmatmul.mubr.msk.f32.vlgmr.msra.gmra.mrb[0].mxu1 %vm572_vm2, %v810_v25  ;;  %3858 = vmatmul.mubr.msk.f32.vlgmr.msra.gmra.mrb[0].mxu0 %vm572_vm2, %v4891_v26  ;;  %v1238_v25 = vld [vmem:[#allocation2 + $0x11] sm:$0xff] }
 0x32f   : > { %3882 = vmatpush3.msk.msra.mxu0 %vm892_vm3, %v3403_v58  ;;  %3756 = vmatprep.mubr.msk.f32.mxu1 %vm572_vm2, %v4893_v27  ;;  %v5016_v58 = vld [vmem:[#allocation2 + $0xef] sm:$0xff] }
 0x330   : > { %3860 = vmatprep.mubr.msk.f32.mxu0 %vm572_vm2, %v4895_v28  ;;  %3778 = vmatpush3.msk.msra.mxu1 %vm892_vm3, %v3331_v1  ;;  %v5018_v1 = vld [vmem:[#allocation2 + $0x111] sm:$0xff] }
 0x331   : > { %3907 = vmatprep.subr.msk.mxu0 %vm892_vm3, %v4903_v29  ;;  %3803 = vmatprep.subr.msk.mxu1 %vm892_vm3, %v4908_v30 }
 0x332   : > { %3757 = vmatmul.mubr.msk.f32.gmra.mrb[2].mxu1 %vm572_vm2, %v4913_v31  ;;  %3861 = vmatmul.mubr.msk.f32.gmra.mrb[2].mxu0 %vm572_vm2, %v4915_v32 }
 0x333   : > { %3759 = vmatprep.mubr.msk.f32.mxu1 %vm572_vm2, %v4919_v33  ;;  %3863 = vmatprep.mubr.msk.f32.mxu0 %vm572_vm2, %v4921_v34 }
 0x336   : > { %3760 = vmatmul.mubr.msk.f32.gmra.mrb[4].mxu1 %vm572_vm2, %v4936_v35  ;;  %3864 = vmatmul.mubr.msk.f32.gmra.mrb[4].mxu0 %vm572_vm2, %v4938_v36 }
 0x337   : > { %3762 = vmatprep.mubr.msk.f32.mxu1 %vm572_vm2, %v4940_v37  ;;  %3866 = vmatprep.mubr.msk.f32.mxu0 %vm572_vm2, %v4942_v38 }
 0x33a   : > { %3763 = vmatmul.mubr.msk.f32.gmra.mrb[6].mxu1 %vm572_vm2, %v4952_v39  ;;  %3867 = vmatmul.mubr.msk.f32.gmra.mrb[6].mxu0 %vm572_vm2, %v4954_v40 }
 0x33b   : > { %3765 = vmatprep.mubr.msk.f32.mxu1 %vm572_vm2, %v4956_v41  ;;  %3869 = vmatprep.mubr.msk.f32.mxu0 %vm572_vm2, %v4958_v42 }
 0x33e   : > { %3766 = vmatmul.mubr.msk.f32.gmra.mrb[8].mxu1 %vm572_vm2, %v4968_v43  ;;  %3870 = vmatmul.mubr.msk.f32.gmra.mrb[8].mxu0 %vm572_vm2, %v4970_v44 }
 0x33f   : > { %3768 = vmatprep.mubr.msk.f32.mxu1 %vm572_vm2, %v4972_v45  ;;  %3872 = vmatprep.mubr.msk.f32.mxu0 %vm572_vm2, %v4974_v46 }
 0x342   : > { %3769 = vmatmul.mubr.msk.f32.gmra.mrb[10].mxu1 %vm572_vm2, %v4984_v47  ;;  %3873 = vmatmul.mubr.msk.f32.gmra.mrb[10].mxu0 %vm572_vm2, %v4986_v48 }
 0x343   : > { %3771 = vmatprep.mubr.msk.f32.mxu1 %vm572_vm2, %v4988_v49  ;;  %3875 = vmatprep.mubr.msk.f32.mxu0 %vm572_vm2, %v4990_v50 }
 0x346   : > { %3772 = vmatmul.mubr.msk.f32.gmra.mrb[12].mxu1 %vm572_vm2, %v5000_v51  ;;  %3876 = vmatmul.mubr.msk.f32.gmra.mrb[12].mxu0 %vm572_vm2, %v5002_v52 }
 0x347   : > { %3774 = vmatprep.mubr.msk.f32.mxu1 %vm572_vm2, %v5004_v53  ;;  %3878 = vmatprep.mubr.msk.f32.mxu0 %vm572_vm2, %v5006_v57 }
 0x34a   : > { %3775 = vmatmul.mubr.msk.f32.gmra.mrb[14].mxu1 %vm572_vm2, %v5016_v58  ;;  %3879 = vmatmul.mubr.msk.f32.gmra.mrb[14].mxu0 %vm572_vm2, %v5018_v1 }
 0x34b   : > { %3779 = vmatprep.mubr.msk.f32.mxu1 %vm572_vm2, %v1237_v23  ;;  %3883 = vmatprep.mubr.msk.f32.mxu0 %vm572_vm2, %v4919_v33 }
 0x34e   : > { %3780 = vmatmul.mubr.msk.f32.vlgmr.msra.gmra.mrb[0].mxu1 %vm572_vm2, %v1238_v25  ;;  %3884 = vmatmul.mubr.msk.f32.vlgmr.msra.gmra.mrb[0].mxu0 %vm572_vm2, %v4936_v35 }
 0x34f   : > { %3908 = vmatpush3.msk.msra.mxu0 %vm892_vm3, %v4903_v29  ;;  %3782 = vmatprep.mubr.msk.f32.mxu1 %vm572_vm2, %v4882_v24  ;;  %v2170_v24 = vld [vmem:[#allocation2 + $0x107] sm:$0xff] }
 0x350   : > { %3886 = vmatprep.mubr.msk.f32.mxu0 %vm572_vm2, %v4940_v37  ;;  %3804 = vmatpush3.msk.msra.mxu1 %vm892_vm3, %v4908_v30  ;;  %v2172_v29 = vld [vmem:[#allocation2 + $0x127] sm:$0xff]  ;;  %v2173_v30 = vld [vmem:[#allocation2 + $0x12f] sm:$0xff] }
 0x351   : > { %3933 = vmatprep.subr.msk.mxu0 %vm892_vm3, %v3439_v17 }
 0x352   : > { %3783 = vmatmul.mubr.msk.f32.gmra.mrb[2].mxu1 %vm572_vm2, %v4891_v26  ;;  %3887 = vmatmul.mubr.msk.f32.gmra.mrb[2].mxu0 %vm572_vm2, %v4952_v39  ;;  %v2171_v26 = vld [vmem:[#allocation2 + $0x10f] sm:$0xff] }
 0x353   : > { %3785 = vmatprep.mubr.msk.f32.mxu1 %vm572_vm2, %v4895_v28  ;;  %3889 = vmatprep.mubr.msk.f32.mxu0 %vm572_vm2, %v4956_v41 }
 0x356   : > { %3786 = vmatmul.mubr.msk.f32.gmra.mrb[4].mxu1 %vm572_vm2, %v4915_v32  ;;  %3890 = vmatmul.mubr.msk.f32.gmra.mrb[4].mxu0 %vm572_vm2, %v4968_v43 }
 0x357   : > { %3788 = vmatprep.mubr.msk.f32.mxu1 %vm572_vm2, %v4921_v34  ;;  %3892 = vmatprep.mubr.msk.f32.mxu0 %vm572_vm2, %v4972_v45 }
 0x35a   : > { %3789 = vmatmul.mubr.msk.f32.gmra.mrb[6].mxu1 %vm572_vm2, %v4938_v36  ;;  %3893 = vmatmul.mubr.msk.f32.gmra.mrb[6].mxu0 %vm572_vm2, %v4984_v47 }
 0x35b   : > { %3791 = vmatprep.mubr.msk.f32.mxu1 %vm572_vm2, %v4942_v38  ;;  %3895 = vmatprep.mubr.msk.f32.mxu0 %vm572_vm2, %v4988_v49 }
 0x35e   : > { %3792 = vmatmul.mubr.msk.f32.gmra.mrb[8].mxu1 %vm572_vm2, %v4954_v40  ;;  %3896 = vmatmul.mubr.msk.f32.gmra.mrb[8].mxu0 %vm572_vm2, %v5000_v51 }
 0x35f   : > { %3794 = vmatprep.mubr.msk.f32.mxu1 %vm572_vm2, %v4958_v42  ;;  %3898 = vmatprep.mubr.msk.f32.mxu0 %vm572_vm2, %v5004_v53 }
 0x362   : > { %3795 = vmatmul.mubr.msk.f32.gmra.mrb[10].mxu1 %vm572_vm2, %v4970_v44  ;;  %3899 = vmatmul.mubr.msk.f32.gmra.mrb[10].mxu0 %vm572_vm2, %v5016_v58 }
 0x363   : > { %3797 = vmatprep.mubr.msk.f32.mxu1 %vm572_vm2, %v4974_v46  ;;  %3901 = vmatprep.mubr.msk.f32.mxu0 %vm572_vm2, %v2170_v24 }
 0x366   : > { %3798 = vmatmul.mubr.msk.f32.gmra.mrb[12].mxu1 %vm572_vm2, %v4986_v48  ;;  %3902 = vmatmul.mubr.msk.f32.gmra.mrb[12].mxu0 %vm572_vm2, %v2171_v26 }
 0x367   : > { %3800 = vmatprep.mubr.msk.f32.mxu1 %vm572_vm2, %v4990_v50  ;;  %3904 = vmatprep.mubr.msk.f32.mxu0 %vm572_vm2, %v2172_v29 }
 0x36a   : > { %3801 = vmatmul.mubr.msk.f32.gmra.mrb[14].mxu1 %vm572_vm2, %v5002_v52  ;;  %3905 = vmatmul.mubr.msk.f32.gmra.mrb[14].mxu0 %vm572_vm2, %v2173_v30 }
 0x36b   : > { %3805 = vmatprep.mubr.msk.f32.mxu1 %vm572_vm2, %v4893_v27  ;;  %3909 = vmatprep.mubr.msk.f32.mxu0 %vm572_vm2, %v4787_v54  ;;  %v2403_v54 = vld [vmem:[#allocation2 + $0x130] sm:$0xff] }
 0x36e   : > { %3806 = vmatmul.mubr.msk.f32.vlgmr.msra.gmra.mrb[0].mxu1 %vm572_vm2, %v4913_v31  ;;  %3910 = vmatmul.mubr.msk.f32.vlgmr.msra.gmra.mrb[0].mxu0 %vm572_vm2, %v4793_v55  ;;  %v2632_v55 = vld [vmem:[#allocation2 + $0x129] sm:$0xff] }
 0x36f   : > { %3934 = vmatpush3.msk.msra.mxu0 %vm892_vm3, %v3439_v17  ;;  %3808 = vmatprep.mubr.msk.f32.mxu1 %vm572_vm2, %v4919_v33  ;;  %v2402_v17 = vld [vmem:[#allocation2 + $0x128] sm:$0xff] }
 0x370   : > { %3912 = vmatprep.mubr.msk.f32.mxu0 %vm572_vm2, %v4798_v56  ;;  %v2633_v56 = vld [vmem:[#allocation2 + $0x131] sm:$0xff] }
 0x372   : > { %3809 = vmatmul.mubr.msk.f32.gmra.mrb[2].mxu1 %vm572_vm2, %v4936_v35  ;;  %3913 = vmatmul.mubr.msk.f32.gmra.mrb[2].mxu0 %vm572_vm2, %v4813_v59  ;;  %v2887_v59 = vld [vmem:[%s5377_s3] sm:$0xf] }
 0x373   : > { %3811 = vmatprep.mubr.msk.f32.mxu1 %vm572_vm2, %v4940_v37  ;;  %3915 = vmatprep.mubr.msk.f32.mxu0 %vm572_vm2, %v4815_v60 }
 0x374   : > { %3959 = vmatprep.subr.msk.mxu1 %vm892_vm3, %v2887_v59 }
 0x375   : > { %3960 = vmatpush3.msk.msra.mxu1 %vm892_vm3, %v2887_v59 }
 0x376   : > { %3812 = vmatmul.mubr.msk.f32.gmra.mrb[4].mxu1 %vm572_vm2, %v4952_v39  ;;  %3916 = vmatmul.mubr.msk.f32.gmra.mrb[4].mxu0 %vm572_vm2, %v4828_v61 }
 0x377   : > { %3814 = vmatprep.mubr.msk.f32.mxu1 %vm572_vm2, %v4956_v41  ;;  %3918 = vmatprep.mubr.msk.f32.mxu0 %vm572_vm2, %v4830_v62 }
 0x37a   : > { %3815 = vmatmul.mubr.msk.f32.gmra.mrb[6].mxu1 %vm572_vm2, %v4968_v43  ;;  %3919 = vmatmul.mubr.msk.f32.gmra.mrb[6].mxu0 %vm572_vm2, %v4840_v63 }
 0x37b   : > { %3817 = vmatprep.mubr.msk.f32.mxu1 %vm572_vm2, %v4972_v45  ;;  %3921 = vmatprep.mubr.msk.f32.mxu0 %vm572_vm2, %v4842_v0 }
 0x37e   : > { %3818 = vmatmul.mubr.msk.f32.gmra.mrb[8].mxu1 %vm572_vm2, %v4984_v47  ;;  %3922 = vmatmul.mubr.msk.f32.gmra.mrb[8].mxu0 %vm572_vm2, %v4856_v2 }
 0x37f   : > { %3820 = vmatprep.mubr.msk.f32.mxu1 %vm572_vm2, %v4988_v49  ;;  %3924 = vmatprep.mubr.msk.f32.mxu0 %vm572_vm2, %v4858_v4 }
 0x382   : > { %3821 = vmatmul.mubr.msk.f32.gmra.mrb[10].mxu1 %vm572_vm2, %v5000_v51  ;;  %3925 = vmatmul.mubr.msk.f32.gmra.mrb[10].mxu0 %vm572_vm2, %v4868_v21 }
 0x383   : > { %3823 = vmatprep.mubr.msk.f32.mxu1 %vm572_vm2, %v5004_v53  ;;  %3927 = vmatprep.mubr.msk.f32.mxu0 %vm572_vm2, %v4870_v20 }
 0x386   : > { %3824 = vmatmul.mubr.msk.f32.gmra.mrb[12].mxu1 %vm572_vm2, %v5016_v58  ;;  %3928 = vmatmul.mubr.msk.f32.gmra.mrb[12].mxu0 %vm572_vm2, %v4880_v22 }
 0x387   : > { %3826 = vmatprep.mubr.msk.f32.mxu1 %vm572_vm2, %v2170_v24  ;;  %3930 = vmatprep.mubr.msk.f32.mxu0 %vm572_vm2, %v2402_v17 }
 0x38a   : > { %3827 = vmatmul.mubr.msk.f32.gmra.mrb[14].mxu1 %vm572_vm2, %v2171_v26  ;;  %3931 = vmatmul.mubr.msk.f32.gmra.mrb[14].mxu0 %vm572_vm2, %v2403_v54 }
 0x38b   : > { %3935 = vmatprep.mubr.msk.f32.mxu0 %vm572_vm2, %v4895_v28 }
 0x38e   : > { %3936 = vmatmul.mubr.msk.f32.vlgmr.msra.gmra.mrb[0].mxu0 %vm572_vm2, %v4915_v32 }
 0x38f   : > { %3938 = vmatprep.mubr.msk.f32.mxu0 %vm572_vm2, %v4921_v34 }
 0x392   : > { %3939 = vmatmul.mubr.msk.f32.gmra.mrb[2].mxu0 %vm572_vm2, %v4938_v36  ;;  %v5195_v36 = vld [vmem:[%s5379_s5] ss:$0 sm:$0xff] }
 0x393   : > { %3941 = vmatprep.mubr.msk.f32.mxu0 %vm572_vm2, %v4942_v38 }
 0x396   : > { %3942 = vmatmul.mubr.msk.f32.gmra.mrb[4].mxu0 %vm572_vm2, %v4954_v40 }
 0x397   : > { %3944 = vmatprep.mubr.msk.f32.mxu0 %vm572_vm2, %v4958_v42 }
 0x39a   : > { %3945 = vmatmul.mubr.msk.f32.gmra.mrb[6].mxu0 %vm572_vm2, %v4970_v44 }
 0x39b   : > { %3947 = vmatprep.mubr.msk.f32.mxu0 %vm572_vm2, %v4974_v46 }
 0x39e   : > { %3948 = vmatmul.mubr.msk.f32.gmra.mrb[8].mxu0 %vm572_vm2, %v4986_v48 }
 0x39f   : > { %3950 = vmatprep.mubr.msk.f32.mxu0 %vm572_vm2, %v4990_v50 }
 0x3a2   : > { %3951 = vmatmul.mubr.msk.f32.gmra.mrb[10].mxu0 %vm572_vm2, %v5002_v52 }
 0x3a3   : > { %3953 = vmatprep.mubr.msk.f32.mxu0 %vm572_vm2, %v5006_v57 }
 0x3a6   : > { %3954 = vmatmul.mubr.msk.f32.gmra.mrb[12].mxu0 %vm572_vm2, %v5018_v1 }
 0x3a7   : > { %3956 = vmatprep.mubr.msk.f32.mxu0 %vm572_vm2, %v2632_v55 }
 0x3aa   : > { %3957 = vmatmul.mubr.msk.f32.gmra.mrb[14].mxu0 %vm572_vm2, %v2633_v56 }
 0x441   : > { %v3807_v60 = vpop.f32.mrb[0].mxu1 }
 0x442   : > { %v1602_v61 = vpop.f32.mrb[1].mxu1 }
 0x445   : > { %v3810_v62 = vpop.f32.mrb[2].mxu1 }
 0x446   : > { %v1612_v63 = vpop.f32.mrb[3].mxu1 }
 0x449   : > { %v3813_v0 = vpop.f32.mrb[4].mxu1 }
 0x44a   : > { %v1622_v2 = vpop.f32.mrb[5].mxu1 }
 0x44d   : > { %v3816_v4 = vpop.f32.mrb[6].mxu1 }
 0x44e   : > { %v1632_v21 = vpop.f32.mrb[7].mxu1 }
 0x451   : > { %v3819_v20 = vpop.f32.mrb[8].mxu1 }
 0x452   : > { %v1642_v22 = vpop.f32.mrb[9].mxu1 }
 0x455   : > { %v3822_v27 = vpop.f32.mrb[10].mxu1 }
 0x456   : > { %v1652_v28 = vpop.f32.mrb[11].mxu1 }
 0x459   : > { %v3825_v31 = vpop.f32.mrb[12].mxu1 }
 0x45a   : > { %v5186_v32 = vpop.f32.mrb[13].mxu1 }
 0x45d   : > { %v5188_v33 = vpop.f32.mrb[14].mxu1 }
 0x45e   : > { %v5190_v34 = vpop.f32.mrb[15].mxu1 }
 0x461   : > { %v3937_v35 = vpop.f32.mrb[0].mxu0 }
 0x462   : > { %v3999_v37 = vadd.f32 %v3937_v35, %v3807_v60  ;;  %v2753_v38 = vpop.f32.mrb[1].mxu0 }
 0x463   : > { %v4000_v39 = vadd.f32 %v2753_v38, %v1602_v61 }
 0x464   : > { %v2856_v40 = vadd.f32 %v3999_v37, %v5195_v36 }
 0x465   : > { %v2855_v41 = vadd.f32 %v4000_v39, %v5195_v36  ;;  %v3940_v42 = vpop.f32.mrb[2].mxu0 }
 0x466   : > { %v4001_v43 = vadd.f32 %v3940_v42, %v3810_v62  ;;  %v2763_v44 = vpop.f32.mrb[3].mxu0  ;;  %v2872_v47 = vmax.f32 %v2856_v40, 0.0 }
 0x467   : > { %v2871_v45 = vmax.f32 %v2855_v41, 0.0  ;;  %v4002_v46 = vadd.f32 %v2763_v44, %v1612_v63 }
 0x468   : > { %v2858_v48 = vadd.f32 %v4001_v43, %v5195_v36 }
 0x469   : > { %v2857_v49 = vadd.f32 %v4002_v46, %v5195_v36  ;;  %v3943_v50 = vpop.f32.mrb[4].mxu0  ;;  %3961 = vmatprep.mubr.msk.f32.mxu1 %vm572_vm2, %v2871_v45 }
 0x46a   : > { %v4003_v51 = vadd.f32 %v3943_v50, %v3813_v0  ;;  %v2773_v52 = vpop.f32.mrb[5].mxu0  ;;  %3962 = vmatmul.mubr.msk.f32.vlgmr.msra.gmra.mrb[16].mxu1 %vm572_vm2, %v2872_v47  ;;  %v2874_v58 = vmax.f32 %v2858_v48, 0.0 }
 0x46b   : > { %v2873_v53 = vmax.f32 %v2857_v49, 0.0  ;;  %v4004_v57 = vadd.f32 %v2773_v52, %v1622_v2 }
 0x46c   : > { %v2860_v1 = vadd.f32 %v4003_v51, %v5195_v36 }
 0x46d   : > { %v2859_v23 = vadd.f32 %v4004_v57, %v5195_v36  ;;  %v3946_v25 = vpop.f32.mrb[6].mxu0  ;;  %3964 = vmatprep.mubr.msk.f32.mxu1 %vm572_vm2, %v2873_v53 }
 0x46e   : > { %v4005_v24 = vadd.f32 %v3946_v25, %v3816_v4  ;;  %v2783_v26 = vpop.f32.mrb[7].mxu0  ;;  %3965 = vmatmul.mubr.msk.f32.gmra.mrb[18].mxu1 %vm572_vm2, %v2874_v58  ;;  %v2876_v17 = vmax.f32 %v2860_v1, 0.0 }
 0x46f   : > { %v2875_v29 = vmax.f32 %v2859_v23, 0.0  ;;  %v4006_v30 = vadd.f32 %v2783_v26, %v1632_v21 }
 0x470   : > { %v2862_v54 = vadd.f32 %v4005_v24, %v5195_v36 }
 0x471   : > { %v2861_v55 = vadd.f32 %v4006_v30, %v5195_v36  ;;  %v3949_v56 = vpop.f32.mrb[8].mxu0  ;;  %3967 = vmatprep.mubr.msk.f32.mxu1 %vm572_vm2, %v2875_v29 }
 0x472   : > { %v4007_v59 = vadd.f32 %v3949_v56, %v3819_v20  ;;  %v2793_v60 = vpop.f32.mrb[9].mxu0  ;;  %3968 = vmatmul.mubr.msk.f32.gmra.mrb[20].mxu1 %vm572_vm2, %v2876_v17  ;;  %v2878_v63 = vmax.f32 %v2862_v54, 0.0 }
 0x473   : > { %v2877_v61 = vmax.f32 %v2861_v55, 0.0  ;;  %v4008_v62 = vadd.f32 %v2793_v60, %v1642_v22 }
 0x474   : > { %v2864_v0 = vadd.f32 %v4007_v59, %v5195_v36 }
 0x475   : > { %v2863_v2 = vadd.f32 %v4008_v62, %v5195_v36  ;;  %v3952_v4 = vpop.f32.mrb[10].mxu0  ;;  %3970 = vmatprep.mubr.msk.f32.mxu1 %vm572_vm2, %v2877_v61 }
 0x476   : > { %v4009_v21 = vadd.f32 %v3952_v4, %v3822_v27  ;;  %v2803_v35 = vpop.f32.mrb[11].mxu0  ;;  %3971 = vmatmul.mubr.msk.f32.gmra.mrb[22].mxu1 %vm572_vm2, %v2878_v63  ;;  %v2880_v20 = vmax.f32 %v2864_v0, 0.0 }
 0x477   : > { %v2879_v37 = vmax.f32 %v2863_v2, 0.0  ;;  %v4010_v38 = vadd.f32 %v2803_v35, %v1652_v28 }
 0x478   : > { %v2866_v39 = vadd.f32 %v4009_v21, %v5195_v36 }
 0x479   : > { %v2865_v40 = vadd.f32 %v4010_v38, %v5195_v36  ;;  %v3955_v22 = vpop.f32.mrb[12].mxu0  ;;  %3973 = vmatprep.mubr.msk.f32.mxu1 %vm572_vm2, %v2879_v37 }
 0x47a   : > { %v4011_v41 = vadd.f32 %v3955_v22, %v3825_v31  ;;  %v2813_v42 = vpop.f32.mrb[13].mxu0  ;;  %3974 = vmatmul.mubr.msk.f32.gmra.mrb[24].mxu1 %vm572_vm2, %v2880_v20  ;;  %v2882_v44 = vmax.f32 %v2866_v39, 0.0 }
 0x47b   : > { %v2881_v43 = vmax.f32 %v2865_v40, 0.0  ;;  %v4012_v27 = vadd.f32 %v2813_v42, %v5186_v32 }
 0x47c   : > { %v2868_v45 = vadd.f32 %v4011_v41, %v5195_v36 }
 0x47d   : > { %v2867_v28 = vadd.f32 %v4012_v27, %v5195_v36  ;;  %v3958_v46 = vpop.f32.mrb[14].mxu0  ;;  %3976 = vmatprep.mubr.msk.f32.mxu1 %vm572_vm2, %v2881_v43 }
 0x47e   : > { %v4013_v47 = vadd.f32 %v3958_v46, %v5188_v33  ;;  %v2823_v48 = vpop.f32.mrb[15].mxu0  ;;  %3977 = vmatmul.mubr.msk.f32.gmra.mrb[26].mxu1 %vm572_vm2, %v2882_v44  ;;  %v2884_v50 = vmax.f32 %v2868_v45, 0.0  ;;  %v5235_v33 = vld [vmem:[%s5380_s6] ss:$0 sm:$0xff] }
 0x47f   : > { %v2883_v31 = vmax.f32 %v2867_v28, 0.0  ;;  %v4014_v49 = vadd.f32 %v2823_v48, %v5190_v34 }
 0x480   : > { %v2870_v51 = vadd.f32 %v4013_v47, %v5195_v36 }
 0x481   : > { %v2869_v32 = vadd.f32 %v4014_v49, %v5195_v36  ;;  %3979 = vmatprep.mubr.msk.f32.mxu1 %vm572_vm2, %v2883_v31 }
 0x482   : > { %3980 = vmatmul.mubr.msk.f32.gmra.mrb[28].mxu1 %vm572_vm2, %v2884_v50  ;;  %v2886_v53 = vmax.f32 %v2870_v51, 0.0 }
 0x483   : > { %v2885_v52 = vmax.f32 %v2869_v32, 0.0 }
 0x485   : > { %3982 = vmatprep.mubr.msk.f32.mxu1 %vm572_vm2, %v2885_v52 }
 0x486   : > { %3983 = vmatmul.mubr.msk.f32.gmra.mrb[30].mxu1 %vm572_vm2, %v2886_v53 }
 0x53d   : > { %v3963_v34 = vpop.f32.mrb[16].mxu1 }
 0x53e   : > { %v3018_v36 = vadd.f32 %v3963_v34, %v5235_v33  ;;  %v3012_v57 = vpop.f32.mrb[17].mxu1 }
 0x53f   : > { %v3013_v58 = vadd.f32 %v5235_v33, %v3012_v57 }
 0x540   : > { %v3092_v1 = vadd.f32 %v3018_v36, %v4641_v6 }
 0x541   : > { %v3091_v23 = vadd.f32 %v3013_v58, %v4631_v3  ;;  %v3966_v25 = vpop.f32.mrb[18].mxu1 }
 0x542   : > { %v3108_v24 = vmax.f32 %v3092_v1, 0.0  ;;  %v3028_v26 = vadd.f32 %v3966_v25, %v5235_v33  ;;  %v3022_v29 = vpop.f32.mrb[19].mxu1 }
 0x543   : > { %v3107_v30 = vmax.f32 %v3091_v23, 0.0  ;;  %v3023_v17 = vadd.f32 %v5235_v33, %v3022_v29 }
 0x544   : > { %3124 = vst.msk [vmem:[%s4730_s22 + $0x8] sm:$0xff] %vm361_vm1, %v3108_v24  ;;  %v3094_v54 = vadd.f32 %v3028_v26, %v4661_v10 }
 0x545   : > { %3123 = vst.msk [vmem:[%s4730_s22] sm:$0xff] %vm361_vm1, %v3107_v30  ;;  %v3093_v6 = vadd.f32 %v3023_v17, %v4647_v8  ;;  %v3969_v55 = vpop.f32.mrb[20].mxu1 }
 0x546   : > { %v3110_v3 = vmax.f32 %v3094_v54, 0.0  ;;  %v3038_v56 = vadd.f32 %v3969_v55, %v5235_v33  ;;  %v3032_v59 = vpop.f32.mrb[21].mxu1 }
 0x547   : > { %v3109_v60 = vmax.f32 %v3093_v6, 0.0  ;;  %v3033_v61 = vadd.f32 %v5235_v33, %v3032_v59 }
 0x548   : > { %3126 = vst.msk [vmem:[%s4730_s22 + $0x18] sm:$0xff] %vm361_vm1, %v3110_v3  ;;  %v3096_v62 = vadd.f32 %v3038_v56, %v4681_v14 }
 0x549   : > { %3125 = vst.msk [vmem:[%s4730_s22 + $0x10] sm:$0xff] %vm361_vm1, %v3109_v60  ;;  %v3095_v10 = vadd.f32 %v3033_v61, %v4667_v12  ;;  %v3972_v63 = vpop.f32.mrb[22].mxu1 }
 0x54a   : > { %v3112_v8 = vmax.f32 %v3096_v62, 0.0  ;;  %v3048_v0 = vadd.f32 %v3972_v63, %v5235_v33  ;;  %v3042_v2 = vpop.f32.mrb[23].mxu1 }
 0x54b   : > { %v3111_v4 = vmax.f32 %v3095_v10, 0.0  ;;  %v3043_v21 = vadd.f32 %v5235_v33, %v3042_v2 }
 0x54c   : > { %3128 = vst.msk [vmem:[%s4730_s22 + $0x28] sm:$0xff] %vm361_vm1, %v3112_v8  ;;  %v3098_v35 = vadd.f32 %v3048_v0, %v4701_v18 }
 0x54d   : > { %3127 = vst.msk [vmem:[%s4730_s22 + $0x20] sm:$0xff] %vm361_vm1, %v3111_v4  ;;  %v3097_v14 = vadd.f32 %v3043_v21, %v4687_v16  ;;  %v3975_v37 = vpop.f32.mrb[24].mxu1 }
 0x54e   : > { %v3114_v12 = vmax.f32 %v3098_v35, 0.0  ;;  %v3058_v38 = vadd.f32 %v3975_v37, %v5235_v33  ;;  %v3052_v20 = vpop.f32.mrb[25].mxu1 }
 0x54f   : > { %v3113_v39 = vmax.f32 %v3097_v14, 0.0  ;;  %v3053_v40 = vadd.f32 %v5235_v33, %v3052_v20 }
 0x550   : > { %3130 = vst.msk [vmem:[%s4730_s22 + $0x38] sm:$0xff] %vm361_vm1, %v3114_v12  ;;  %v3100_v18 = vadd.f32 %v3058_v38, %v4644_v7 }
 0x551   : > { %3129 = vst.msk [vmem:[%s4730_s22 + $0x30] sm:$0xff] %vm361_vm1, %v3113_v39  ;;  %v3099_v16 = vadd.f32 %v3053_v40, %v4636_v5  ;;  %v3978_v22 = vpop.f32.mrb[26].mxu1 }
 0x552   : > { %v3116_v41 = vmax.f32 %v3100_v18, 0.0  ;;  %v3068_v42 = vadd.f32 %v3978_v22, %v5235_v33  ;;  %v3062_v43 = vpop.f32.mrb[27].mxu1 }
 0x553   : > { %v3115_v27 = vmax.f32 %v3099_v16, 0.0  ;;  %v3063_v44 = vadd.f32 %v5235_v33, %v3062_v43 }
 0x554   : > { %3132 = vst.msk [vmem:[%s4730_s22 + $0x48] sm:$0xff] %vm361_vm1, %v3116_v41  ;;  %v3102_v45 = vadd.f32 %v3068_v42, %v4664_v11 }
 0x555   : > { %3131 = vst.msk [vmem:[%s4730_s22 + $0x40] sm:$0xff] %vm361_vm1, %v3115_v27  ;;  %v3101_v7 = vadd.f32 %v3063_v44, %v4650_v9  ;;  %v3981_v28 = vpop.f32.mrb[28].mxu1 }
 0x556   : > { %v3118_v5 = vmax.f32 %v3102_v45, 0.0  ;;  %v3078_v46 = vadd.f32 %v3981_v28, %v5235_v33  ;;  %v3072_v47 = vpop.f32.mrb[29].mxu1 }
 0x557   : > { %v3117_v48 = vmax.f32 %v3101_v7, 0.0  ;;  %v3073_v31 = vadd.f32 %v5235_v33, %v3072_v47 }
 0x558   : > { %3134 = vst.msk [vmem:[%s4730_s22 + $0x58] sm:$0xff] %vm361_vm1, %v3118_v5  ;;  %v3104_v11 = vadd.f32 %v3078_v46, %v4684_v15 }
 0x559   : > { %3133 = vst.msk [vmem:[%s4730_s22 + $0x50] sm:$0xff] %vm361_vm1, %v3117_v48  ;;  %v3103_v9 = vadd.f32 %v3073_v31, %v4670_v13  ;;  %v3984_v49 = vpop.f32.mrb[30].mxu1  ;;  %v5402_v13 = vld [vmem:[#allocation13_spill] sm:$0xff] }
 0x55a   : > { %v3120_v50 = vmax.f32 %v3104_v11, 0.0  ;;  %v3088_v51 = vadd.f32 %v3984_v49, %v5235_v33  ;;  %v3082_v32 = vpop.f32.mrb[31].mxu1 }
 0x55b   : > { %v3119_v52 = vmax.f32 %v3103_v9, 0.0  ;;  %v3083_v53 = vadd.f32 %v5235_v33, %v3082_v32 }
 0x55c   : > { %3136 = vst.msk [vmem:[%s4730_s22 + $0x68] sm:$0xff] %vm361_vm1, %v3120_v50  ;;  %v3106_v15 = vadd.f32 %v3088_v51, %v4704_v19 }
 0x55d   : > { %3135 = vst.msk [vmem:[%s4730_s22 + $0x60] sm:$0xff] %vm361_vm1, %v3119_v52  ;;  %v3105_v34 = vadd.f32 %v3083_v53, %v5402_v13 }
 0x55e   : > { %v3122_v36 = vmax.f32 %v3106_v15, 0.0 }
 0x55f   : > { %v3121_v33 = vmax.f32 %v3105_v34, 0.0 }
 0x560   : > { %3138 = vst.msk [vmem:[%s4730_s22 + $0x78] sm:$0xff] %vm361_vm1, %v3122_v36 }
 0x561   : > { %3137 = vst.msk [vmem:[%s4730_s22 + $0x70] sm:$0xff] %vm361_vm1, %v3121_v33 }
 0x562   : > { %4279 = shalt.err (!%p4276_p5)
}
 0x563   : > { %s4280_s22 = scalar_lea.hbm %s5303_s10, 2048  ;;  %s4284_s12 = scalar_lea.hbm %s5403_s7, 8192 }
 0x564   : > { %p4281_p8 = scmp.ne.s32.totalorder %s5303_s10, %s4280_s22  ;;  %p4285_p12 = scmp.lt.u32.totalorder %s5303_s10, %s5403_s7 }
 0x565   : > { %p4286_p2 = scmp.lt.u32.totalorder %s4284_s12, %s4280_s22  ;;  %p4288_p0 = scmp.lt.u32.totalorder %s4280_s22, %s5303_s10 }
 0x566   : > { %p4282_p10 = pnand %p4281_p8, %p5405_p1 }
 0x567   : > { %p4287_p4 = por %p4286_p2, %p4285_p12 }
 0x568   : > { %p4283_p7 = pneg %p4282_p10 }
 0x569   : > { %p4289_p6 = por %p4288_p0, %p4287_p4 }
 0x56b   : > { %p4290_p9 = pnand %p4289_p6, %p4283_p7 }
 0x56d   : > { %4293 = shalt.err (!%p4290_p9)
}
 0x56e   : > { %s4397_s13 = smov 128   ;;  %s4398_s19 = smov 8  }
 0x56f   : > { %4129 = dma.vmem_to_hbm [thread:$0]  (%p5405_p1), %s5305_s8, 2048, %s5303_s10, %s5313_s18, %s4397_s13, %s4397_s13, %s4398_s19  }
 0x570 PF: > { %p4140_p3 = scmp.ge.s32.totalorder %s4388_s11, 2  ;;  %s3171_s20 = sand.u32 1, %s4348_s24  }
 0x571   : > { %p5406_p11 = scmp.ne.s32.totalorder %s5398_s9, 0  ;;  %s3172_s15 = scalar_lea.sflag [#allocation5], %s3171_s20 }
 0x573   : > { %p4136_p13 = pnand %p4140_p3, %p5406_p11 }
 0x575   : > { %4343 = dma.done.wait (!%p4136_p13), %s3172_s15, 2048  }
 0x576   : > { %4345 = vsyncadd (!%p4136_p13), %s3172_s15, 4294965248  ;;  %s23_s11 = sadd.s32 1, %s4388_s11   ;;  %s5407_s23 = smov %s4526_s27 }
 0x577   : > { %p20_p5 = scmp.ge.s32.totalorder %s23_s11, 6   ;;  %s5408_s30 = sld [smem:[#allocation9_spill]] }
 0x578   : > { %s5409_s8 = sld [smem:[#allocation10_spill]]  ;;  %s5410_s9 = sld [smem:[#allocation11_spill]] }
 0x579   : > { %s5411_s10 = sld [smem:[#allocation12_spill]]  ;;  %s5412_s24 = smov %s4352_s25 }
 0x57a   : > { %s5413_s25 = smov %s4356_s26  ;;  %s5414_s26 = smov %s4529_s14 }
 0x57b   : > { %s5415_s27 = smov %s4364_s28  ;;  %s5416_s28 = smov %s4368_s29 }
 0x57c   : > { %s5417_s29 = smov %s5407_s23  ;;  %22 = sbr.rel (!%p20_p5) target bundleno = 11 (0xb), region = 124 }
 0x583   :  { %3177 = vsyncpa [#allocation4], 1 }
 0x584   :  { %3179 = vsyncpa [#allocation4 + $0x1], 1 }
 0x585   :  { %3180 = vsyncpa [#allocation5], 1 }
 0x586   :  { %3182 = vsyncpa [#allocation5 + $0x1], 1 }

</bundles_post_ra>
